<compile_context>
chip_gen: v7x
topology: tpu7x:2x2x1
jax: 0.10.0
libtpu: 0.0.40
codegen_flags: <defaults>
</compile_context>

<pallas_src>
import functools

import jax
import jax.numpy as jnp
from jax.experimental import pallas as pl
from jax.experimental.pallas import tpu as pltpu


def _pick_row_tile(n_rows, row_len, n_lanes, *, acc_budget=64 * 1024, m_target=512):
    """Pick a row-tile height TH (a divisor of n_rows).

    Prefers the smallest TH with TH*row_len >= m_target (big matmul M dim) while
    keeping the f32 accumulator (TH*row_len, n_lanes) under `acc_budget` bytes
    so we do not flip into a spill-bound regime.
    """
    divs = [d for d in range(1, n_rows + 1) if n_rows % d == 0]
    ok = [d for d in divs if d * row_len * n_lanes * 4 <= acc_budget] or [1]
    big = [d for d in ok if d * row_len >= m_target]
    return min(big) if big else max(ok)


def _group_kernel(x_ref, w1_ref, b1_ref, w2_ref, b2_ref, out_ref, mid_ref, *,
                  H, W, Cin, Cmid, Cout, K, P, TH1, TH2, Hout, Wout):
    f32 = jnp.float32
    bf16 = jnp.bfloat16
    Hp = H + 2 * P
    Wp = W + 2 * P

    # --- zero the halo border of the conv_a intermediate (interior is always
    #     fully overwritten below); redone every grid step -> megacore-safe. ---
    if P > 0:
        zrow = jnp.zeros((P, Wp, Cmid), f32)
        mid_ref[0:P, :, :] = zrow
        mid_ref[Hp - P:Hp, :, :] = zrow
        zcol = jnp.zeros((Hp, P, Cmid), f32)
        mid_ref[:, 0:P, :] = zcol
        mid_ref[:, Wp - P:Wp, :] = zcol

    # --- conv_a: 1x1 conv + bias + MFM; one merged (M, 2*Cmid) dot per tile.
    #     Result stays in the f32 VMEM scratch (padded interior). ---
    w1 = w1_ref[...]                                              # (Cin, 2*Cmid) bf16
    b1 = jnp.broadcast_to(b1_ref[...], (TH1 * W, 2 * Cmid))       # hoisted, f32
    for t in range(H // TH1):                                     # static -> fully unrolled
        xt = x_ref[0, t * TH1 * W:(t + 1) * TH1 * W, :].astype(bf16)   # (TH1*W, Cin)
        y = jnp.dot(xt, w1, preferred_element_type=f32) + b1           # (TH1*W, 2*Cmid)
        m = jnp.maximum(y[:, :Cmid], y[:, Cmid:])                      # MFM (VPU max, f32)
        mid_ref[P + t * TH1:P + (t + 1) * TH1, P:P + W, :] = m.reshape(TH1, W, Cmid)

    # --- conv: KxK conv + bias + MFM; one merged (M, 2*Cout) dot per tap. ---
    w2 = [[w2_ref[dy, dx] for dx in range(K)] for dy in range(K)]  # (Cmid, 2*Cout) bf16, hoisted
    b2 = jnp.broadcast_to(b2_ref[...], (TH2 * Wout, 2 * Cout))     # hoisted, f32
    for t in range(Hout // TH2):                                   # static -> fully unrolled
        r0 = t * TH2
        acc = b2                                                   # bias folded into init
        for dy in range(K):
            for dx in range(K):
                patch = mid_ref[r0 + dy:r0 + dy + TH2, dx:dx + Wout, :]   # (TH2, Wout, Cmid)
                pm = patch.reshape(TH2 * Wout, Cmid).astype(bf16)
                acc = acc + jnp.dot(pm, w2[dy][dx], preferred_element_type=f32)
        out = jnp.maximum(acc[:, :Cout], acc[:, Cout:])            # MFM (VPU max, f32)
        out_ref[0, r0 * Wout:(r0 + TH2) * Wout, :] = out.astype(out_ref.dtype)


def group_forward(x_nchw, params, *, kernel_size=3, stride=1, padding=1):
    """Exact semantics of group.forward on NCHW input (stride=1 only)."""
    if stride != 1:
        # TODO(synk): strided second conv not implemented (LightCNN group always uses stride=1).
        raise NotImplementedError("group_forward: stride != 1 not supported")

    N, Cin, H, W = x_nchw.shape
    Cmid = Cin                                   # conv_a is Cin -> Cin
    K, P = kernel_size, padding
    Cout = params["w2"].shape[-1] // 2
    Hout = H + 2 * P - K + 1
    Wout = W + 2 * P - K + 1

    # Wrapper glue: NCHW -> flat (N, H*W, C) matmul layout.
    x_flat = jnp.transpose(x_nchw, (0, 2, 3, 1)).reshape(N, H * W, Cin)

    # bf16 matmul operands (accumulation stays f32 inside the kernel).
    w1 = params["w1"].astype(jnp.bfloat16)                         # (Cin, 2*Cmid)
    w2 = params["w2"].astype(jnp.bfloat16)                         # (K, K, Cmid, 2*Cout)
    b1 = params["b1"].reshape(1, 2 * Cmid).astype(jnp.float32)
    b2 = params["b2"].reshape(1, 2 * Cout).astype(jnp.float32)

    TH1 = _pick_row_tile(H, W, 2 * Cmid)
    TH2 = _pick_row_tile(Hout, Wout, 2 * Cout)

    kernel = functools.partial(
        _group_kernel, H=H, W=W, Cin=Cin, Cmid=Cmid, Cout=Cout,
        K=K, P=P, TH1=TH1, TH2=TH2, Hout=Hout, Wout=Wout)

    def const(*shape):
        return pl.BlockSpec(shape, lambda n: (0,) * len(shape))

    out_flat = pl.pallas_call(
        kernel,
        out_shape=jax.ShapeDtypeStruct((N, Hout * Wout, Cout), x_nchw.dtype),
        grid_spec=pltpu.PrefetchScalarGridSpec(
            num_scalar_prefetch=0,
            grid=(N,),
            in_specs=[
                pl.BlockSpec((1, H * W, Cin), lambda n: (n, 0, 0)),   # x
                const(Cin, 2 * Cmid),                                 # w1
                const(1, 2 * Cmid),                                   # b1
                const(K, K, Cmid, 2 * Cout),                          # w2
                const(1, 2 * Cout),                                   # b2
            ],
            out_specs=pl.BlockSpec((1, Hout * Wout, Cout), lambda n: (n, 0, 0)),
            scratch_shapes=[
                pltpu.VMEM((H + 2 * P, W + 2 * P, Cmid), jnp.float32),  # conv_a out (padded)
            ],
        ),
        compiler_params=pltpu.CompilerParams(dimension_semantics=("parallel",)),
    )(x_flat, w1, b1, w2, b2)

    out = out_flat.reshape(N, Hout, Wout, Cout)
    return jnp.transpose(out, (0, 3, 1, 2))                       # NHWC -> NCHW


def init_params(key, in_channels, out_channels, kernel_size=3):
    """PyTorch Conv2d default init: U(-1/sqrt(fan_in), 1/sqrt(fan_in))."""
    k1, k2, k3, k4 = jax.random.split(key, 4)
    bnd1 = 1.0 / (in_channels * 1 * 1) ** 0.5
    bnd2 = 1.0 / (in_channels * kernel_size * kernel_size) ** 0.5
    w1 = jax.random.uniform(k1, (in_channels, 2 * in_channels), jnp.float32, -bnd1, bnd1)
    b1 = jax.random.uniform(k2, (2 * in_channels,), jnp.float32, -bnd1, bnd1)
    w2 = jax.random.uniform(k3, (kernel_size, kernel_size, in_channels, 2 * out_channels),
                            jnp.float32, -bnd2, bnd2)
    b2 = jax.random.uniform(k4, (2 * out_channels,), jnp.float32, -bnd2, bnd2)
    return {"w1": w1, "b1": b1, "w2": w2, "b2": b2}


def _reference(x_nchw, params, *, kernel_size=3, stride=1, padding=1):
    """Pure-JAX reference (lax.conv) with the same bf16-operand / f32-accumulate
    quantization as the kernel, so the comparison tolerance can stay tight."""
    def mfm_conv(x, w_hwio, b, pad, strd):
        w_oihw = jnp.transpose(w_hwio, (3, 2, 0, 1)).astype(jnp.bfloat16)
        y = jax.lax.conv_general_dilated(
            x.astype(jnp.bfloat16), w_oihw, (strd, strd), ((pad, pad), (pad, pad)),
            dimension_numbers=("NCHW", "OIHW", "NCHW"),
            preferred_element_type=jnp.float32)
        y = y + b.reshape(1, -1, 1, 1).astype(jnp.float32)
        c = y.shape[1] // 2
        return jnp.maximum(y[:, :c], y[:, c:])

    Cin = x_nchw.shape[1]
    mid = mfm_conv(x_nchw, params["w1"].reshape(1, 1, Cin, -1), params["b1"], 0, 1)
    out = mfm_conv(mid, params["w2"], params["b2"], padding, stride)
    return out


if __name__ == "__main__":
    key = jax.random.PRNGKey(0)
    k_x, k_p = jax.random.split(key)

    N, Cin, Cout, H, W = 2, 4, 8, 16, 16
    x = jax.random.normal(k_x, (N, Cin, H, W), jnp.float32)
    params = init_params(k_p, Cin, Cout, kernel_size=3)

    out = group_forward(x, params, kernel_size=3, stride=1, padding=1)
    out = jax.block_until_ready(out)

    ref = _reference(x, params, kernel_size=3, stride=1, padding=1)
    assert out.shape == (N, Cout, H, W)
    max_err = float(jnp.max(jnp.abs(out - ref)))
    assert jnp.allclose(out, ref, atol=2e-2, rtol=2e-2), max_err

    print("KERNEL_OK")
</pallas_src>

<mosaic_0001>
module attributes {stable_mosaic.version = 11 : i64} {
  func.func @_group_kernel(%arg0: i32, %arg1: memref<1x256x4xf32, #tpu.memory_space<vmem>>, %arg2: memref<4x8xbf16, #tpu.memory_space<vmem>>, %arg3: memref<1x8xf32, #tpu.memory_space<vmem>>, %arg4: memref<3x3x4x16xbf16, #tpu.memory_space<vmem>>, %arg5: memref<1x16xf32, #tpu.memory_space<vmem>>, %arg6: memref<1x256x8xf32, #tpu.memory_space<vmem>>, %arg7: memref<18x18x4xf32, #tpu.memory_space<vmem>>) attributes {dimension_semantics = [#tpu.dimension_semantics<parallel>], iteration_bounds = array<i64: 2>, scalar_prefetch = 0 : i64, scratch_operands = 1 : i64, tpu.core_type = #tpu.core_type<tc>, window_params = [{transform_indices = @transform_0, window_bounds = array<i64: 1, 256, 4>}, {pipeline_mode = #tpu.pipeline_mode<synchronous>, transform_indices = @transform_1, window_bounds = array<i64: 4, 8>}, {pipeline_mode = #tpu.pipeline_mode<synchronous>, transform_indices = @transform_2, window_bounds = array<i64: 1, 8>}, {pipeline_mode = #tpu.pipeline_mode<synchronous>, transform_indices = @transform_3, window_bounds = array<i64: 3, 3, 4, 16>}, {pipeline_mode = #tpu.pipeline_mode<synchronous>, transform_indices = @transform_4, window_bounds = array<i64: 1, 16>}, {transform_indices = @transform_5, window_bounds = array<i64: 1, 256, 8>}]} {
    %cst = arith.constant 0.000000e+00 : f32
    %0 = vector.broadcast %cst : f32 to vector<1x18x4xf32>
    %c0 = arith.constant 0 : index
    %c0_0 = arith.constant 0 : index
    %c0_1 = arith.constant 0 : index
    %1 = vector.load %arg7[%c0, %c0_0, %c0_1] : memref<18x18x4xf32, #tpu.memory_space<vmem>>, vector<1x18x4xf32>
    tpu.vector_store %arg7[%c0, %c0_0, %c0_1], %0 {strides = array<i32>} : memref<18x18x4xf32, #tpu.memory_space<vmem>>, vector<1x18x4xf32>,
    %c17 = arith.constant 17 : index
    %c0_2 = arith.constant 0 : index
    %c0_3 = arith.constant 0 : index
    %2 = vector.load %arg7[%c17, %c0_2, %c0_3] : memref<18x18x4xf32, #tpu.memory_space<vmem>>, vector<1x18x4xf32>
    tpu.vector_store %arg7[%c17, %c0_2, %c0_3], %0 {strides = array<i32>} : memref<18x18x4xf32, #tpu.memory_space<vmem>>, vector<1x18x4xf32>,
    %cst_4 = arith.constant 0.000000e+00 : f32
    %3 = vector.broadcast %cst_4 : f32 to vector<18x1x4xf32>
    %c0_5 = arith.constant 0 : index
    %c0_6 = arith.constant 0 : index
    %c0_7 = arith.constant 0 : index
    %4 = vector.load %arg7[%c0_5, %c0_6, %c0_7] : memref<18x18x4xf32, #tpu.memory_space<vmem>>, vector<18x1x4xf32>
    tpu.vector_store %arg7[%c0_5, %c0_6, %c0_7], %3 {strides = array<i32>} : memref<18x18x4xf32, #tpu.memory_space<vmem>>, vector<18x1x4xf32>,
    %c0_8 = arith.constant 0 : index
    %c17_9 = arith.constant 17 : index
    %c0_10 = arith.constant 0 : index
    %5 = vector.load %arg7[%c0_8, %c17_9, %c0_10] : memref<18x18x4xf32, #tpu.memory_space<vmem>>, vector<18x1x4xf32>
    tpu.vector_store %arg7[%c0_8, %c17_9, %c0_10], %3 {strides = array<i32>} : memref<18x18x4xf32, #tpu.memory_space<vmem>>, vector<18x1x4xf32>,
    %c0_11 = arith.constant 0 : index
    %c0_12 = arith.constant 0 : index
    %6 = vector.load %arg2[%c0_11, %c0_12] : memref<4x8xbf16, #tpu.memory_space<vmem>>, vector<4x8xbf16>
    %c0_13 = arith.constant 0 : index
    %c0_14 = arith.constant 0 : index
    %7 = vector.load %arg3[%c0_13, %c0_14] : memref<1x8xf32, #tpu.memory_space<vmem>>, vector<1x8xf32>
    %8 = vector.shape_cast %7 : vector<1x8xf32> to vector<1x8xf32>
    %9 = vector.broadcast %8 : vector<1x8xf32> to vector<256x8xf32>
    %c0_15 = arith.constant 0 : index
    %c0_16 = arith.constant 0 : index
    %c0_17 = arith.constant 0 : index
    %10 = vector.load %arg1[%c0_15, %c0_16, %c0_17] : memref<1x256x4xf32, #tpu.memory_space<vmem>>, vector<1x256x4xf32>
    %11 = vector.shape_cast %10 : vector<1x256x4xf32> to vector<256x4xf32>
    %12 = arith.truncf %11 : vector<256x4xf32> to vector<256x4xbf16>
    %cst_18 = arith.constant dense<0.000000e+00> : vector<256x8xf32>
    %13 = tpu.matmul %12, %6, %cst_18 {dimension_numbers = #tpu.dot_dimension_numbers<[1], [0], [0], [1], [0, 0, 1, 1], [], []>} : vector<256x4xbf16>, vector<4x8xbf16>, vector<256x8xf32> -> vector<256x8xf32>
    %14 = arith.addf %13, %9 : vector<256x8xf32>
    %15 = vector.extract_strided_slice %14 {offsets = [0, 0], sizes = [256, 4], strides = [1, 1]} : vector<256x8xf32> to vector<256x4xf32>
    %16 = vector.extract_strided_slice %14 {offsets = [0, 4], sizes = [256, 4], strides = [1, 1]} : vector<256x8xf32> to vector<256x4xf32>
    %17 = arith.maximumf %15, %16 : vector<256x4xf32>
    %18 = vector.shape_cast %17 : vector<256x4xf32> to vector<16x16x4xf32>
    %c1 = arith.constant 1 : index
    %c1_19 = arith.constant 1 : index
    %c0_20 = arith.constant 0 : index
    %19 = vector.load %arg7[%c1, %c1_19, %c0_20] : memref<18x18x4xf32, #tpu.memory_space<vmem>>, vector<16x16x4xf32>
    tpu.vector_store %arg7[%c1, %c1_19, %c0_20], %18 {strides = array<i32>} : memref<18x18x4xf32, #tpu.memory_space<vmem>>, vector<16x16x4xf32>,
    %c0_21 = arith.constant 0 : index
    %c0_22 = arith.constant 0 : index
    %c0_23 = arith.constant 0 : index
    %c0_24 = arith.constant 0 : index
    %20 = vector.load %arg4[%c0_21, %c0_22, %c0_23, %c0_24] : memref<3x3x4x16xbf16, #tpu.memory_space<vmem>>, vector<1x1x4x16xbf16>
    %21 = vector.shape_cast %20 : vector<1x1x4x16xbf16> to vector<4x16xbf16>
    %c0_25 = arith.constant 0 : index
    %c1_26 = arith.constant 1 : index
    %c0_27 = arith.constant 0 : index
    %c0_28 = arith.constant 0 : index
    %22 = vector.load %arg4[%c0_25, %c1_26, %c0_27, %c0_28] : memref<3x3x4x16xbf16, #tpu.memory_space<vmem>>, vector<1x1x4x16xbf16>
    %23 = vector.shape_cast %22 : vector<1x1x4x16xbf16> to vector<4x16xbf16>
    %c0_29 = arith.constant 0 : index
    %c2 = arith.constant 2 : index
    %c0_30 = arith.constant 0 : index
    %c0_31 = arith.constant 0 : index
    %24 = vector.load %arg4[%c0_29, %c2, %c0_30, %c0_31] : memref<3x3x4x16xbf16, #tpu.memory_space<vmem>>, vector<1x1x4x16xbf16>
    %25 = vector.shape_cast %24 : vector<1x1x4x16xbf16> to vector<4x16xbf16>
    %c1_32 = arith.constant 1 : index
    %c0_33 = arith.constant 0 : index
    %c0_34 = arith.constant 0 : index
    %c0_35 = arith.constant 0 : index
    %26 = vector.load %arg4[%c1_32, %c0_33, %c0_34, %c0_35] : memref<3x3x4x16xbf16, #tpu.memory_space<vmem>>, vector<1x1x4x16xbf16>
    %27 = vector.shape_cast %26 : vector<1x1x4x16xbf16> to vector<4x16xbf16>
    %c1_36 = arith.constant 1 : index
    %c1_37 = arith.constant 1 : index
    %c0_38 = arith.constant 0 : index
    %c0_39 = arith.constant 0 : index
    %28 = vector.load %arg4[%c1_36, %c1_37, %c0_38, %c0_39] : memref<3x3x4x16xbf16, #tpu.memory_space<vmem>>, vector<1x1x4x16xbf16>
    %29 = vector.shape_cast %28 : vector<1x1x4x16xbf16> to vector<4x16xbf16>
    %c1_40 = arith.constant 1 : index
    %c2_41 = arith.constant 2 : index
    %c0_42 = arith.constant 0 : index
    %c0_43 = arith.constant 0 : index
    %30 = vector.load %arg4[%c1_40, %c2_41, %c0_42, %c0_43] : memref<3x3x4x16xbf16, #tpu.memory_space<vmem>>, vector<1x1x4x16xbf16>
    %31 = vector.shape_cast %30 : vector<1x1x4x16xbf16> to vector<4x16xbf16>
    %c2_44 = arith.constant 2 : index
    %c0_45 = arith.constant 0 : index
    %c0_46 = arith.constant 0 : index
    %c0_47 = arith.constant 0 : index
    %32 = vector.load %arg4[%c2_44, %c0_45, %c0_46, %c0_47] : memref<3x3x4x16xbf16, #tpu.memory_space<vmem>>, vector<1x1x4x16xbf16>
    %33 = vector.shape_cast %32 : vector<1x1x4x16xbf16> to vector<4x16xbf16>
    %c2_48 = arith.constant 2 : index
    %c1_49 = arith.constant 1 : index
    %c0_50 = arith.constant 0 : index
    %c0_51 = arith.constant 0 : index
    %34 = vector.load %arg4[%c2_48, %c1_49, %c0_50, %c0_51] : memref<3x3x4x16xbf16, #tpu.memory_space<vmem>>, vector<1x1x4x16xbf16>
    %35 = vector.shape_cast %34 : vector<1x1x4x16xbf16> to vector<4x16xbf16>
    %c2_52 = arith.constant 2 : index
    %c2_53 = arith.constant 2 : index
    %c0_54 = arith.constant 0 : index
    %c0_55 = arith.constant 0 : index
    %36 = vector.load %arg4[%c2_52, %c2_53, %c0_54, %c0_55] : memref<3x3x4x16xbf16, #tpu.memory_space<vmem>>, vector<1x1x4x16xbf16>
    %37 = vector.shape_cast %36 : vector<1x1x4x16xbf16> to vector<4x16xbf16>
    %c0_56 = arith.constant 0 : index
    %c0_57 = arith.constant 0 : index
    %38 = vector.load %arg5[%c0_56, %c0_57] : memref<1x16xf32, #tpu.memory_space<vmem>>, vector<1x16xf32>
    %39 = vector.shape_cast %38 : vector<1x16xf32> to vector<1x16xf32>
    %40 = vector.broadcast %39 : vector<1x16xf32> to vector<256x16xf32>
    %c0_58 = arith.constant 0 : index
    %c0_59 = arith.constant 0 : index
    %c0_60 = arith.constant 0 : index
    %41 = vector.load %arg7[%c0_58, %c0_59, %c0_60] : memref<18x18x4xf32, #tpu.memory_space<vmem>>, vector<16x16x4xf32>
    %42 = vector.shape_cast %41 : vector<16x16x4xf32> to vector<256x4xf32>
    %43 = arith.truncf %42 : vector<256x4xf32> to vector<256x4xbf16>
    %cst_61 = arith.constant dense<0.000000e+00> : vector<256x16xf32>
    %44 = tpu.matmul %43, %21, %cst_61 {dimension_numbers = #tpu.dot_dimension_numbers<[1], [0], [0], [1], [0, 0, 1, 1], [], []>} : vector<256x4xbf16>, vector<4x16xbf16>, vector<256x16xf32> -> vector<256x16xf32>
    %45 = arith.addf %40, %44 : vector<256x16xf32>
    %c0_62 = arith.constant 0 : index
    %c1_63 = arith.constant 1 : index
    %c0_64 = arith.constant 0 : index
    %46 = vector.load %arg7[%c0_62, %c1_63, %c0_64] : memref<18x18x4xf32, #tpu.memory_space<vmem>>, vector<16x16x4xf32>
    %47 = vector.shape_cast %46 : vector<16x16x4xf32> to vector<256x4xf32>
    %48 = arith.truncf %47 : vector<256x4xf32> to vector<256x4xbf16>
    %cst_65 = arith.constant dense<0.000000e+00> : vector<256x16xf32>
    %49 = tpu.matmul %48, %23, %cst_65 {dimension_numbers = #tpu.dot_dimension_numbers<[1], [0], [0], [1], [0, 0, 1, 1], [], []>} : vector<256x4xbf16>, vector<4x16xbf16>, vector<256x16xf32> -> vector<256x16xf32>
    %50 = arith.addf %45, %49 : vector<256x16xf32>
    %c0_66 = arith.constant 0 : index
    %c2_67 = arith.constant 2 : index
    %c0_68 = arith.constant 0 : index
    %51 = vector.load %arg7[%c0_66, %c2_67, %c0_68] : memref<18x18x4xf32, #tpu.memory_space<vmem>>, vector<16x16x4xf32>
    %52 = vector.shape_cast %51 : vector<16x16x4xf32> to vector<256x4xf32>
    %53 = arith.truncf %52 : vector<256x4xf32> to vector<256x4xbf16>
    %cst_69 = arith.constant dense<0.000000e+00> : vector<256x16xf32>
    %54 = tpu.matmul %53, %25, %cst_69 {dimension_numbers = #tpu.dot_dimension_numbers<[1], [0], [0], [1], [0, 0, 1, 1], [], []>} : vector<256x4xbf16>, vector<4x16xbf16>, vector<256x16xf32> -> vector<256x16xf32>
    %55 = arith.addf %50, %54 : vector<256x16xf32>
    %c1_70 = arith.constant 1 : index
    %c0_71 = arith.constant 0 : index
    %c0_72 = arith.constant 0 : index
    %56 = vector.load %arg7[%c1_70, %c0_71, %c0_72] : memref<18x18x4xf32, #tpu.memory_space<vmem>>, vector<16x16x4xf32>
    %57 = vector.shape_cast %56 : vector<16x16x4xf32> to vector<256x4xf32>
    %58 = arith.truncf %57 : vector<256x4xf32> to vector<256x4xbf16>
    %cst_73 = arith.constant dense<0.000000e+00> : vector<256x16xf32>
    %59 = tpu.matmul %58, %27, %cst_73 {dimension_numbers = #tpu.dot_dimension_numbers<[1], [0], [0], [1], [0, 0, 1, 1], [], []>} : vector<256x4xbf16>, vector<4x16xbf16>, vector<256x16xf32> -> vector<256x16xf32>
    %60 = arith.addf %55, %59 : vector<256x16xf32>
    %c1_74 = arith.constant 1 : index
    %c1_75 = arith.constant 1 : index
    %c0_76 = arith.constant 0 : index
    %61 = vector.load %arg7[%c1_74, %c1_75, %c0_76] : memref<18x18x4xf32, #tpu.memory_space<vmem>>, vector<16x16x4xf32>
    %62 = vector.shape_cast %61 : vector<16x16x4xf32> to vector<256x4xf32>
    %63 = arith.truncf %62 : vector<256x4xf32> to vector<256x4xbf16>
    %cst_77 = arith.constant dense<0.000000e+00> : vector<256x16xf32>
    %64 = tpu.matmul %63, %29, %cst_77 {dimension_numbers = #tpu.dot_dimension_numbers<[1], [0], [0], [1], [0, 0, 1, 1], [], []>} : vector<256x4xbf16>, vector<4x16xbf16>, vector<256x16xf32> -> vector<256x16xf32>
    %65 = arith.addf %60, %64 : vector<256x16xf32>
    %c1_78 = arith.constant 1 : index
    %c2_79 = arith.constant 2 : index
    %c0_80 = arith.constant 0 : index
    %66 = vector.load %arg7[%c1_78, %c2_79, %c0_80] : memref<18x18x4xf32, #tpu.memory_space<vmem>>, vector<16x16x4xf32>
    %67 = vector.shape_cast %66 : vector<16x16x4xf32> to vector<256x4xf32>
    %68 = arith.truncf %67 : vector<256x4xf32> to vector<256x4xbf16>
    %cst_81 = arith.constant dense<0.000000e+00> : vector<256x16xf32>
    %69 = tpu.matmul %68, %31, %cst_81 {dimension_numbers = #tpu.dot_dimension_numbers<[1], [0], [0], [1], [0, 0, 1, 1], [], []>} : vector<256x4xbf16>, vector<4x16xbf16>, vector<256x16xf32> -> vector<256x16xf32>
    %70 = arith.addf %65, %69 : vector<256x16xf32>
    %c2_82 = arith.constant 2 : index
    %c0_83 = arith.constant 0 : index
    %c0_84 = arith.constant 0 : index
    %71 = vector.load %arg7[%c2_82, %c0_83, %c0_84] : memref<18x18x4xf32, #tpu.memory_space<vmem>>, vector<16x16x4xf32>
    %72 = vector.shape_cast %71 : vector<16x16x4xf32> to vector<256x4xf32>
    %73 = arith.truncf %72 : vector<256x4xf32> to vector<256x4xbf16>
    %cst_85 = arith.constant dense<0.000000e+00> : vector<256x16xf32>
    %74 = tpu.matmul %73, %33, %cst_85 {dimension_numbers = #tpu.dot_dimension_numbers<[1], [0], [0], [1], [0, 0, 1, 1], [], []>} : vector<256x4xbf16>, vector<4x16xbf16>, vector<256x16xf32> -> vector<256x16xf32>
    %75 = arith.addf %70, %74 : vector<256x16xf32>
    %c2_86 = arith.constant 2 : index
    %c1_87 = arith.constant 1 : index
    %c0_88 = arith.constant 0 : index
    %76 = vector.load %arg7[%c2_86, %c1_87, %c0_88] : memref<18x18x4xf32, #tpu.memory_space<vmem>>, vector<16x16x4xf32>
    %77 = vector.shape_cast %76 : vector<16x16x4xf32> to vector<256x4xf32>
    %78 = arith.truncf %77 : vector<256x4xf32> to vector<256x4xbf16>
    %cst_89 = arith.constant dense<0.000000e+00> : vector<256x16xf32>
    %79 = tpu.matmul %78, %35, %cst_89 {dimension_numbers = #tpu.dot_dimension_numbers<[1], [0], [0], [1], [0, 0, 1, 1], [], []>} : vector<256x4xbf16>, vector<4x16xbf16>, vector<256x16xf32> -> vector<256x16xf32>
    %80 = arith.addf %75, %79 : vector<256x16xf32>
    %c2_90 = arith.constant 2 : index
    %c2_91 = arith.constant 2 : index
    %c0_92 = arith.constant 0 : index
    %81 = vector.load %arg7[%c2_90, %c2_91, %c0_92] : memref<18x18x4xf32, #tpu.memory_space<vmem>>, vector<16x16x4xf32>
    %82 = vector.shape_cast %81 : vector<16x16x4xf32> to vector<256x4xf32>
    %83 = arith.truncf %82 : vector<256x4xf32> to vector<256x4xbf16>
    %cst_93 = arith.constant dense<0.000000e+00> : vector<256x16xf32>
    %84 = tpu.matmul %83, %37, %cst_93 {dimension_numbers = #tpu.dot_dimension_numbers<[1], [0], [0], [1], [0, 0, 1, 1], [], []>} : vector<256x4xbf16>, vector<4x16xbf16>, vector<256x16xf32> -> vector<256x16xf32>
    %85 = arith.addf %80, %84 : vector<256x16xf32>
    %86 = vector.extract_strided_slice %85 {offsets = [0, 0], sizes = [256, 8], strides = [1, 1]} : vector<256x16xf32> to vector<256x8xf32>
    %87 = vector.extract_strided_slice %85 {offsets = [0, 8], sizes = [256, 8], strides = [1, 1]} : vector<256x16xf32> to vector<256x8xf32>
    %88 = arith.maximumf %86, %87 : vector<256x8xf32>
    %c0_94 = arith.constant 0 : index
    %c0_95 = arith.constant 0 : index
    %c0_96 = arith.constant 0 : index
    %89 = vector.load %arg6[%c0_94, %c0_95, %c0_96] : memref<1x256x8xf32, #tpu.memory_space<vmem>>, vector<1x256x8xf32>
    %90 = vector.shape_cast %89 : vector<1x256x8xf32> to vector<256x8xf32>
    %91 = vector.shape_cast %88 : vector<256x8xf32> to vector<1x256x8xf32>
    tpu.vector_store %arg6[%c0_94, %c0_95, %c0_96], %91 {strides = array<i32>} : memref<1x256x8xf32, #tpu.memory_space<vmem>>, vector<1x256x8xf32>,
    return
  }
  func.func @transform_0(%arg0: i32) -> (i32, i32, i32) {
    %c0_i32 = arith.constant 0 : i32
    %c0_i32_0 = arith.constant 0 : i32
    %c0_i32_1 = arith.constant 0 : i32
    return %arg0, %c0_i32, %c0_i32_0 : i32, i32, i32
  }
  func.func @transform_1(%arg0: i32) -> (i32, i32) {
    %c0_i32 = arith.constant 0 : i32
    %c0_i32_0 = arith.constant 0 : i32
    %c0_i32_1 = arith.constant 0 : i32
    return %c0_i32, %c0_i32_0 : i32, i32
  }
  func.func @transform_2(%arg0: i32) -> (i32, i32) {
    %c0_i32 = arith.constant 0 : i32
    %c0_i32_0 = arith.constant 0 : i32
    %c0_i32_1 = arith.constant 0 : i32
    return %c0_i32, %c0_i32_0 : i32, i32
  }
  func.func @transform_3(%arg0: i32) -> (i32, i32, i32, i32) {
    %c0_i32 = arith.constant 0 : i32
    %c0_i32_0 = arith.constant 0 : i32
    %c0_i32_1 = arith.constant 0 : i32
    %c0_i32_2 = arith.constant 0 : i32
    %c0_i32_3 = arith.constant 0 : i32
    return %c0_i32, %c0_i32_0, %c0_i32_1, %c0_i32_2 : i32, i32, i32, i32
  }
  func.func @transform_4(%arg0: i32) -> (i32, i32) {
    %c0_i32 = arith.constant 0 : i32
    %c0_i32_0 = arith.constant 0 : i32
    %c0_i32_1 = arith.constant 0 : i32
    return %c0_i32, %c0_i32_0 : i32, i32
  }
  func.func @transform_5(%arg0: i32) -> (i32, i32, i32) {
    %c0_i32 = arith.constant 0 : i32
    %c0_i32_0 = arith.constant 0 : i32
    %c0_i32_1 = arith.constant 0 : i32
    return %arg0, %c0_i32, %c0_i32_0 : i32, i32, i32
  }
}

</mosaic_0001>

<bundles_post_ra>
// kernel: tpu_custom_call.1
= control target key start
LH: loop header
LB: loop body
LE: loop exit
PB: predicated region body
PF: predicated region fallthrough
CT: control target
= control target key end

     0   :  { %s4678_s18 = smov 0   ;;  %s5830_s0 = inlined_call_operand.vmem [shape: f32[2,256,4], index: 0, kind: input, shape index: {}]   ;;  %s5831_s1 = inlined_call_operand.vmem [shape: bf16[4,8], index: 1, kind: input, shape index: {}]   ;;  %s5832_s2 = inlined_call_operand.vmem [shape: f32[1,8], index: 2, kind: input, shape index: {}]   ;;  %s5833_s3 = inlined_call_operand.vmem [shape: bf16[3,3,4,16], index: 3, kind: input, shape index: {}]   ;;  %s5834_s4 = inlined_call_operand.vmem [shape: f32[1,16], index: 4, kind: input, shape index: {}]   ;;  %s5835_s5 = inlined_call_operand.vmem [shape: f32[2,256,8], index: 5, kind: output, shape index: {}]  }
   0x1 LB: > { %s3635_s19 = sadd.s32 4294967295, %s4643_s18   ;;  %p3639_p0 = scmp.ge.s32.totalorder %s4643_s18, 1  ;;  %s4643_s18 = sphi %s4678_s18, %s15_s18  }
   0x2   : > { %p187_p1 = scmp.lt.s32.totalorder %s4643_s18, 3 }
   0x4   : > { %p188_p2 = pnand %p3639_p0, %p187_p1 }
   0x5   : > { %v272_v0 = vld [vmem:[%s5831_s1] sm:$0x3] (!%p188_p2)  ;;  %vm376_vm0 = vcmask (!%p188_p2), 1041408   ;;  %p215_p3 = scmp.lt.s32.totalorder (!%p188_p2), %s3635_s19, 1  ;;  %vm226_vm1 = vcmask (!%p188_p2), 31744   ;;  %vm235_vm2 = vcmask (!%p188_p2), 24576  }
   0x6   : > { %191 = sbr.rel (%p188_p2) target bundleno = 1020 (0x3fc), region = 40  ;;  %4616 = vmatprep.subr.msk.bf16.mxu0 (!%p188_p2), %vm376_vm0, %v272_v0  ;;  %v378_v1 = vsel (!%p188_p2), %vm376_vm0, %v272_v0, 0  ;;  %v4645_v50 = vmov (!%p188_p2), 0.0   ;;  %v4828_v51 = vld [vmem:[%s5832_s2] ss:$0 sm:$0xff] (!%p188_p2)  ;;  %s4646_s30 = smov (!%p188_p2), 124  }
   0x7   : > { %3989 = vmatpush3.bf16.msra.mxu0 (!%p188_p2), %v378_v1  ;;  %227 = vst.msk [vmem:[#allocation2] sm:$0xff] (!%p188_p2), %vm226_vm1, %v4645_v50  ;;  %228 = vst.msk [vmem:[#allocation2 + $0x8] sm:$0xff] (!%p188_p2), %vm226_vm1, %v4645_v50  ;;  %v734_v57 = vld [vmem:[%s5833_s3] sm:$0x3] (!%p188_p2)  ;;  %v3664_v60 = vld [vmem:[%s5833_s3 + $0x8] sm:$0x3] (!%p188_p2) }
   0x8   : > { %232 = vst.msk [vmem:[#allocation2 + $0x198] sm:$0xff] (!%p188_p2), %vm226_vm1, %v4645_v50  ;;  %233 = vst.msk [vmem:[#allocation2 + $0x1a0] sm:$0xff] (!%p188_p2), %vm226_vm1, %v4645_v50  ;;  %4617 = vmatprep.subr.msk.bf16.mxu0 (!%p188_p2), %vm376_vm0, %v734_v57  ;;  %v855_v59 = vsel (!%p188_p2), %vm376_vm0, %v734_v57, 0  ;;  %v2023_v63 = vsel (!%p188_p2), %vm376_vm0, %v3664_v60, 0  ;;  %4621 = vmatprep.subr.msk.bf16.mxu1 (!%p188_p2), %vm376_vm0, %v3664_v60  ;;  %vm229_vm3 = vcmask (!%p188_p2), 25600   ;;  %s4647_s27 = smov (!%p188_p2), 120  }
   0x9   : > { %237 = vst.msk [vmem:[#allocation2 + $0x18] sm:$0x1] (!%p188_p2), %vm235_vm2, %v4645_v50  ;;  %238 = vst.msk [vmem:[#allocation2 + $0x30] sm:$0x1] (!%p188_p2), %vm235_vm2, %v4645_v50  ;;  %4159 = vmatpush3.bf16.msra.mxu1 (!%p188_p2), %v2023_v63  ;;  %vm3547_vm4 = vcmask (!%p188_p2), 64512  }
   0xa   : > { %239 = vst.msk [vmem:[#allocation2 + $0x48] sm:$0x1] (!%p188_p2), %vm235_vm2, %v4645_v50  ;;  %240 = vst.msk [vmem:[#allocation2 + $0x60] sm:$0x1] (!%p188_p2), %vm235_vm2, %v4645_v50 }
   0xb   : > { %241 = vst.msk [vmem:[#allocation2 + $0x78] sm:$0x1] (!%p188_p2), %vm235_vm2, %v4645_v50  ;;  %242 = vst.msk [vmem:[#allocation2 + $0x90] sm:$0x1] (!%p188_p2), %vm235_vm2, %v4645_v50 }
   0xc   : > { %243 = vst.msk [vmem:[#allocation2 + $0xa8] sm:$0x1] (!%p188_p2), %vm235_vm2, %v4645_v50  ;;  %244 = vst.msk [vmem:[#allocation2 + $0xc0] sm:$0x1] (!%p188_p2), %vm235_vm2, %v4645_v50 }
   0xd   : > { %s5837_s19 = smov (!%p215_p3, %s3635_s19), 1  ;;  %245 = vst.msk [vmem:[#allocation2 + $0xd8] sm:$0x1] %vm235_vm2, %v4645_v50  ;;  %246 = vst.msk [vmem:[#allocation2 + $0xf0] sm:$0x1] %vm235_vm2, %v4645_v50 }
   0xe   : > { %s3816_s22 = sshll.u32 %s5837_s19, 8  ;;  %247 = vst.msk [vmem:[#allocation2 + $0x108] sm:$0x1] %vm235_vm2, %v4645_v50  ;;  %248 = vst.msk [vmem:[#allocation2 + $0x120] sm:$0x1] %vm235_vm2, %v4645_v50  ;;  %v759_v62 = vld [vmem:[#allocation2 + $0x8] sm:$0xff] }
   0xf   : > { %s4699_s25 = scalar_lea.vmem %s5830_s0, %s3816_s22  ;;  %249 = vst.msk [vmem:[#allocation2 + $0x138] sm:$0x1] %vm235_vm2, %v4645_v50  ;;  %250 = vst.msk [vmem:[#allocation2 + $0x150] sm:$0x1] %vm235_vm2, %v4645_v50 }
  0x10   : > { %v280_v2 = vld [vmem:[%s4699_s25] sm:$0xff]  ;;  %v281_v3 = vld [vmem:[%s4699_s25 + $0x8] sm:$0xff]  ;;  %v282_v4 = vld [vmem:[%s4699_s25 + $0x10] sm:$0xff]  ;;  %251 = vst.msk [vmem:[#allocation2 + $0x168] sm:$0x1] %vm235_vm2, %v4645_v50 }
  0x11   : > { %v312_v5 = vpack.c.bf16 %v281_v3, %v280_v2  ;;  %v283_v6 = vld [vmem:[%s4699_s25 + $0x18] sm:$0xff]  ;;  %v284_v7 = vld [vmem:[%s4699_s25 + $0x20] sm:$0xff]  ;;  %v285_v8 = vld [vmem:[%s4699_s25 + $0x28] sm:$0xff]  ;;  %252 = vst.msk [vmem:[#allocation2 + $0x180] sm:$0x1] %vm235_vm2, %v4645_v50 }
  0x12   : > { %v313_v9 = vpack.c.bf16 %v283_v6, %v282_v4  ;;  %v314_v10 = vpack.c.bf16 %v285_v8, %v284_v7  ;;  %v286_v11 = vld [vmem:[%s4699_s25 + $0x30] sm:$0xff]  ;;  %v287_v12 = vld [vmem:[%s4699_s25 + $0x38] sm:$0xff]  ;;  %v288_v13 = vld [vmem:[%s4699_s25 + $0x40] sm:$0xff]  ;;  %255 = vst.msk [vmem:[#allocation2 + $0x29] sm:$0x1] %vm235_vm2, %v4645_v50 }
  0x13   : > { %3990 = vmatprep.mubr.msk.bf16.mxu0 %vm226_vm1, %v312_v5  ;;  %v289_v14 = vld [vmem:[%s4699_s25 + $0x48] sm:$0xff]  ;;  %v315_v15 = vpack.c.bf16 %v287_v12, %v286_v11  ;;  %v290_v17 = vld [vmem:[%s4699_s25 + $0x50] sm:$0xff]  ;;  %v291_v18 = vld [vmem:[%s4699_s25 + $0x58] sm:$0xff]  ;;  %256 = vst.msk [vmem:[#allocation2 + $0x41] sm:$0x1] %vm235_vm2, %v4645_v50 }
  0x14   : > { %3991 = vmatmul.mubr.msk.bf16.vlgmr.msra.gmra.mrb[0].mxu0 %vm226_vm1, %v313_v9  ;;  %v316_v16 = vpack.c.bf16 %v289_v14, %v288_v13  ;;  %v292_v19 = vld [vmem:[%s4699_s25 + $0x60] sm:$0xff]  ;;  %v293_v20 = vld [vmem:[%s4699_s25 + $0x68] sm:$0xff]  ;;  %v317_v21 = vpack.c.bf16 %v291_v18, %v290_v17  ;;  %v294_v23 = vld [vmem:[%s4699_s25 + $0x70] sm:$0xff]  ;;  %257 = vst.msk [vmem:[#allocation2 + $0x59] sm:$0x1] %vm235_vm2, %v4645_v50 }
  0x15   : > { %3994 = vmatprep.mubr.msk.bf16.mxu0 %vm226_vm1, %v314_v10  ;;  %v318_v22 = vpack.c.bf16 %v293_v20, %v292_v19  ;;  %v295_v24 = vld [vmem:[%s4699_s25 + $0x78] sm:$0xff]  ;;  %v296_v25 = vld [vmem:[%s4699_s25 + $0x80] sm:$0xff]  ;;  %v297_v26 = vld [vmem:[%s4699_s25 + $0x88] sm:$0xff]  ;;  %258 = vst.msk [vmem:[#allocation2 + $0x71] sm:$0x1] %vm235_vm2, %v4645_v50  ;;  %4023 = vmatpush3.bf16.msra.mxu0 %v855_v59 }
  0x16   : > { %v319_v27 = vpack.c.bf16 %v295_v24, %v294_v23  ;;  %v320_v28 = vpack.c.bf16 %v297_v26, %v296_v25  ;;  %v298_v29 = vld [vmem:[%s4699_s25 + $0x90] sm:$0xff]  ;;  %v299_v30 = vld [vmem:[%s4699_s25 + $0x98] sm:$0xff]  ;;  %v300_v31 = vld [vmem:[%s4699_s25 + $0xa0] sm:$0xff]  ;;  %259 = vst.msk [vmem:[#allocation2 + $0x89] sm:$0x1] %vm235_vm2, %v4645_v50 }
  0x17   : > { %v301_v32 = vld [vmem:[%s4699_s25 + $0xa8] sm:$0xff]  ;;  %v321_v33 = vpack.c.bf16 %v299_v30, %v298_v29  ;;  %v302_v35 = vld [vmem:[%s4699_s25 + $0xb0] sm:$0xff]  ;;  %v303_v36 = vld [vmem:[%s4699_s25 + $0xb8] sm:$0xff]  ;;  %260 = vst.msk [vmem:[#allocation2 + $0xa1] sm:$0x1] %vm235_vm2, %v4645_v50 }
  0x18   : > { %v322_v34 = vpack.c.bf16 %v301_v32, %v300_v31  ;;  %v304_v37 = vld [vmem:[%s4699_s25 + $0xc0] sm:$0xff]  ;;  %v305_v38 = vld [vmem:[%s4699_s25 + $0xc8] sm:$0xff]  ;;  %v323_v39 = vpack.c.bf16 %v303_v36, %v302_v35  ;;  %v306_v41 = vld [vmem:[%s4699_s25 + $0xd0] sm:$0xff]  ;;  %261 = vst.msk [vmem:[#allocation2 + $0xb9] sm:$0x1] %vm235_vm2, %v4645_v50 }
  0x19   : > { %v324_v40 = vpack.c.bf16 %v305_v38, %v304_v37  ;;  %v307_v42 = vld [vmem:[%s4699_s25 + $0xd8] sm:$0xff]  ;;  %v308_v43 = vld [vmem:[%s4699_s25 + $0xe0] sm:$0xff]  ;;  %v309_v44 = vld [vmem:[%s4699_s25 + $0xe8] sm:$0xff]  ;;  %262 = vst.msk [vmem:[#allocation2 + $0xd1] sm:$0x1] %vm235_vm2, %v4645_v50 }
  0x1a   : > { %v325_v45 = vpack.c.bf16 %v307_v42, %v306_v41  ;;  %v326_v46 = vpack.c.bf16 %v309_v44, %v308_v43  ;;  %v310_v47 = vld [vmem:[%s4699_s25 + $0xf0] sm:$0xff]  ;;  %v311_v48 = vld [vmem:[%s4699_s25 + $0xf8] sm:$0xff]  ;;  %263 = vst.msk [vmem:[#allocation2 + $0xe9] sm:$0x1] %vm235_vm2, %v4645_v50  ;;  %264 = vst.msk [vmem:[#allocation2 + $0x101] sm:$0x1] %vm235_vm2, %v4645_v50 }
  0x1b   : > { %v327_v49 = vpack.c.bf16 %v311_v48, %v310_v47  ;;  %265 = vst.msk [vmem:[#allocation2 + $0x119] sm:$0x1] %vm235_vm2, %v4645_v50  ;;  %266 = vst.msk [vmem:[#allocation2 + $0x131] sm:$0x1] %vm235_vm2, %v4645_v50  ;;  %v4864_v5 = vld [vmem:[%s5833_s3 + $0xa] sm:$0x3] }
  0x1c   : > { %3995 = vmatmul.mubr.msk.bf16.gmra.mrb[4].mxu0 %vm226_vm1, %v315_v15  ;;  %267 = vst.msk [vmem:[#allocation2 + $0x149] sm:$0x1] %vm235_vm2, %v4645_v50  ;;  %268 = vst.msk [vmem:[#allocation2 + $0x161] sm:$0x1] %vm235_vm2, %v4645_v50  ;;  %4622 = vmatprep.subr.msk.bf16.mxu1 %vm376_vm0, %v4864_v5 }
  0x1d   : > { %3998 = vmatprep.mubr.msk.bf16.mxu0 %vm226_vm1, %v316_v16  ;;  %269 = vst.msk [vmem:[#allocation2 + $0x179] sm:$0x1] %vm235_vm2, %v4645_v50  ;;  %270 = vst.msk [vmem:[#allocation2 + $0x191] sm:$0x1] %vm235_vm2, %v4645_v50 }
  0x1e   : > { %236 = vst.msk [vmem:[#allocation2] sm:$0x1] %vm235_vm2, %v4645_v50  ;;  %253 = vst.msk [vmem:[#allocation2 + $0x198] sm:$0x1] %vm235_vm2, %v4645_v50 }
  0x1f   : > { %230 = vst.msk [vmem:[#allocation2 + $0x10] sm:$0x3] %vm229_vm3, %v4645_v50  ;;  %234 = vst.msk [vmem:[#allocation2 + $0x1a8] sm:$0x3] %vm229_vm3, %v4645_v50 }
  0x20   : > { %254 = vst.msk [vmem:[#allocation2 + $0x11] sm:$0x1] %vm235_vm2, %v4645_v50  ;;  %271 = vst.msk [vmem:[#allocation2 + $0x1a9] sm:$0x1] %vm235_vm2, %v4645_v50 }
  0x24   : > { %3999 = vmatmul.mubr.msk.bf16.gmra.mrb[8].mxu0 %vm226_vm1, %v317_v21 }
  0x25   : > { %4002 = vmatprep.mubr.msk.bf16.mxu0 %vm226_vm1, %v318_v22  ;;  %v758_v61 = vld [vmem:[#allocation2] sm:$0xff] }
  0x26   : > { %v790_v0 = vpack.c.bf16 %v759_v62, %v758_v61 }
  0x2c   : > { %4003 = vmatmul.mubr.msk.bf16.gmra.mrb[12].mxu0 %vm226_vm1, %v319_v27 }
  0x2d   : > { %4006 = vmatprep.mubr.msk.bf16.mxu0 %vm226_vm1, %v320_v28 }
  0x34   : > { %4007 = vmatmul.mubr.msk.bf16.gmra.mrb[16].mxu0 %vm226_vm1, %v321_v33 }
  0x35   : > { %4010 = vmatprep.mubr.msk.bf16.mxu0 %vm226_vm1, %v322_v34 }
  0x3c   : > { %4011 = vmatmul.mubr.msk.bf16.gmra.mrb[20].mxu0 %vm226_vm1, %v323_v39 }
  0x3d   : > { %4014 = vmatprep.mubr.msk.bf16.mxu0 %vm226_vm1, %v324_v40 }
  0x44   : > { %4015 = vmatmul.mubr.msk.bf16.gmra.mrb[24].mxu0 %vm226_vm1, %v325_v45 }
  0x45   : > { %4018 = vmatprep.mubr.msk.bf16.mxu0 %vm226_vm1, %v326_v46 }
  0x4c   : > { %4019 = vmatmul.mubr.msk.bf16.gmra.mrb[28].mxu0 %vm226_vm1, %v327_v49 }
  0x4d   : > { %4024 = vmatprep.mubr.msk.bf16.mxu0 %vm226_vm1, %v790_v0  ;;  %v3661_v0 = vld [vmem:[%s5833_s3 + $0x2] sm:$0x3] }
  0x4e   : > { %4618 = vmatprep.subr.msk.bf16.mxu0 %vm376_vm0, %v3661_v0 }
  0xe7   : > { %v3992_v52 = vpop.f32.mrb[0].mxu0 }
  0xe8   : > { %v4831_v53 = vadd.f32 %v3992_v52, %v4828_v51  ;;  %v414_v54 = vpop.f32.mrb[1].mxu0 }
  0xe9   : > { %v4834_v55 = vadd.f32 %v4828_v51, %v414_v54  ;;  %v3993_v56 = vpop.f32.mrb[2].mxu0 }
  0xea   : > { %577 = vrot.lane.b32.xlu1 %v4831_v53, %s4646_s30  ;;  %v417_v58 = vpop.f32.mrb[3].mxu0  ;;  %v4850_v1 = vadd.f32 %v3993_v56, %v4828_v51 }
  0xeb   : > { %573 = vrot.lane.b32.xlu0 %v4834_v55, %s4646_s30  ;;  %v4854_v2 = vadd.f32 %v4828_v51, %v417_v58 }
  0xee   : > { %579 = vrot.lane.b32.xlu1 %v4850_v1, %s4646_s30 }
  0xef   : > { %v3996_v3 = vpop.f32.mrb[4].mxu0  ;;  %575 = vrot.lane.b32.xlu0 %v4854_v2, %s4646_s30 }
  0xf0   : > { %v430_v4 = vpop.f32.mrb[5].mxu0  ;;  %v4877_v10 = vadd.f32 %v3996_v3, %v4828_v51 }
  0xf1   : > { %v4867_v6 = vadd.f32 %v4828_v51, %v430_v4  ;;  %v3997_v7 = vpop.f32.mrb[6].mxu0 }
  0xf2   : > { %v433_v8 = vpop.f32.mrb[7].mxu0  ;;  %v4882_v11 = vadd.f32 %v3997_v7, %v4828_v51 }
  0xf3   : > { %v4872_v9 = vadd.f32 %v4828_v51, %v433_v8  ;;  %581 = vrot.lane.b32.xlu0 %v4867_v6, %s4646_s30 }
  0xf5   : > { %583 = vrot.lane.b32.xlu1 %v4872_v9, %s4646_s30 }
  0xf7   : > { %v4000_v12 = vpop.f32.mrb[8].mxu0  ;;  %585 = vrot.lane.b32.xlu0 %v4877_v10, %s4646_s30 }
  0xf8   : > { %v446_v13 = vpop.f32.mrb[9].mxu0  ;;  %v4897_v18 = vadd.f32 %v4000_v12, %v4828_v51 }
  0xf9   : > { %v4887_v14 = vadd.f32 %v4828_v51, %v446_v13  ;;  %v4001_v15 = vpop.f32.mrb[10].mxu0  ;;  %587 = vrot.lane.b32.xlu1 %v4882_v11, %s4646_s30 }
  0xfa   : > { %v449_v16 = vpop.f32.mrb[11].mxu0  ;;  %v4902_v19 = vadd.f32 %v4001_v15, %v4828_v51 }
  0xfb   : > { %v4892_v17 = vadd.f32 %v4828_v51, %v449_v16  ;;  %589 = vrot.lane.b32.xlu0 %v4887_v14, %s4646_s30 }
  0xfd   : > { %591 = vrot.lane.b32.xlu1 %v4892_v17, %s4646_s30 }
  0xff   : > { %v4004_v20 = vpop.f32.mrb[12].mxu0  ;;  %593 = vrot.lane.b32.xlu0 %v4897_v18, %s4646_s30 }
 0x100   : > { %v462_v21 = vpop.f32.mrb[13].mxu0  ;;  %v4917_v26 = vadd.f32 %v4004_v20, %v4828_v51 }
 0x101   : > { %v4907_v22 = vadd.f32 %v4828_v51, %v462_v21  ;;  %v4005_v23 = vpop.f32.mrb[14].mxu0  ;;  %595 = vrot.lane.b32.xlu1 %v4902_v19, %s4646_s30 }
 0x102   : > { %v465_v24 = vpop.f32.mrb[15].mxu0  ;;  %v4922_v27 = vadd.f32 %v4005_v23, %v4828_v51 }
 0x103   : > { %v4912_v25 = vadd.f32 %v4828_v51, %v465_v24  ;;  %597 = vrot.lane.b32.xlu0 %v4907_v22, %s4646_s30 }
 0x105   : > { %599 = vrot.lane.b32.xlu1 %v4912_v25, %s4646_s30 }
 0x107   : > { %v4008_v28 = vpop.f32.mrb[16].mxu0  ;;  %601 = vrot.lane.b32.xlu0 %v4917_v26, %s4646_s30 }
 0x108   : > { %v478_v29 = vpop.f32.mrb[17].mxu0  ;;  %v4937_v34 = vadd.f32 %v4008_v28, %v4828_v51 }
 0x109   : > { %v4927_v30 = vadd.f32 %v4828_v51, %v478_v29  ;;  %v4009_v31 = vpop.f32.mrb[18].mxu0  ;;  %603 = vrot.lane.b32.xlu1 %v4922_v27, %s4646_s30 }
 0x10a   : > { %v481_v32 = vpop.f32.mrb[19].mxu0  ;;  %v4942_v35 = vadd.f32 %v4009_v31, %v4828_v51 }
 0x10b   : > { %v4932_v33 = vadd.f32 %v4828_v51, %v481_v32  ;;  %605 = vrot.lane.b32.xlu0 %v4927_v30, %s4646_s30 }
 0x10d   : > { %607 = vrot.lane.b32.xlu1 %v4932_v33, %s4646_s30 }
 0x10f   : > { %v4012_v36 = vpop.f32.mrb[20].mxu0  ;;  %609 = vrot.lane.b32.xlu0 %v4937_v34, %s4646_s30 }
 0x110   : > { %v494_v37 = vpop.f32.mrb[21].mxu0  ;;  %v4957_v42 = vadd.f32 %v4012_v36, %v4828_v51 }
 0x111   : > { %v4947_v38 = vadd.f32 %v4828_v51, %v494_v37  ;;  %v4013_v39 = vpop.f32.mrb[22].mxu0  ;;  %611 = vrot.lane.b32.xlu1 %v4942_v35, %s4646_s30 }
 0x112   : > { %v497_v40 = vpop.f32.mrb[23].mxu0  ;;  %v4962_v43 = vadd.f32 %v4013_v39, %v4828_v51 }
 0x113   : > { %v4952_v41 = vadd.f32 %v4828_v51, %v497_v40  ;;  %613 = vrot.lane.b32.xlu0 %v4947_v38, %s4646_s30 }
 0x115   : > { %615 = vrot.lane.b32.xlu1 %v4952_v41, %s4646_s30 }
 0x117   : > { %v4016_v44 = vpop.f32.mrb[24].mxu0  ;;  %617 = vrot.lane.b32.xlu0 %v4957_v42, %s4646_s30 }
 0x118   : > { %v510_v45 = vpop.f32.mrb[25].mxu0  ;;  %v4977_v52 = vadd.f32 %v4016_v44, %v4828_v51  ;;  %v2315_v44 = vsel %vm376_vm0, %v4864_v5, 0  ;;  %v5058_v5 = vld [vmem:[%s5833_s3 + $0x4] sm:$0x3] }
 0x119   : > { %v4967_v46 = vadd.f32 %v4828_v51, %v510_v45  ;;  %v4017_v47 = vpop.f32.mrb[26].mxu0  ;;  %619 = vrot.lane.b32.xlu1 %v4962_v43, %s4646_s30  ;;  %v1147_v45 = vsel %vm376_vm0, %v3661_v0, 0 }
 0x11a   : > { %v513_v48 = vpop.f32.mrb[27].mxu0  ;;  %v4982_v54 = vadd.f32 %v4017_v47, %v4828_v51  ;;  %v5053_v47 = vld [vmem:[%s5833_s3 + $0xc] sm:$0x3] }
 0x11b   : > { %v4972_v49 = vadd.f32 %v4828_v51, %v513_v48  ;;  %621 = vrot.lane.b32.xlu0 %v4967_v46, %s4646_s30 }
 0x11d   : > { %623 = vrot.lane.b32.xlu1 %v4972_v49, %s4646_s30 }
 0x11f   : > { %v4020_v56 = vpop.f32.mrb[28].mxu0  ;;  %625 = vrot.lane.b32.xlu0 %v4977_v52, %s4646_s30 }
 0x120   : > { %v526_v57 = vpop.f32.mrb[29].mxu0  ;;  %v4999_v62 = vadd.f32 %v4020_v56, %v4828_v51 }
 0x121   : > { %v4987_v58 = vadd.f32 %v4828_v51, %v526_v57  ;;  %v4021_v59 = vpop.f32.mrb[30].mxu0  ;;  %627 = vrot.lane.b32.xlu1 %v4982_v54, %s4646_s30 }
 0x122   : > { %v529_v60 = vpop.f32.mrb[31].mxu0  ;;  %v5008_v63 = vadd.f32 %v4021_v59, %v4828_v51 }
 0x123   : > { %v4992_v61 = vadd.f32 %v4828_v51, %v529_v60  ;;  %629 = vrot.lane.b32.xlu0 %v4987_v58, %s4646_s30 }
 0x125   : > { %631 = vrot.lane.b32.xlu1 %v4992_v61, %s4646_s30 }
 0x127   : > { %633 = vrot.lane.b32.xlu0 %v4999_v62, %s4646_s30 }
 0x129   : > { %635 = vrot.lane.b32.xlu1 %v5008_v63, %s4646_s30  ;;  %s5729_s30 = scalar_lea.vmem %s5835_s5, %s3816_s22 }
 0x15c   : > { %v578_v3 = vpop.permute.xlu1 %577 }
 0x15d   : > { %v671_v4 = vmax.f32 %v4831_v53, %v578_v3  ;;  %v574_v7 = vpop.permute.xlu0 %573 }
 0x15e   : > { %v669_v50 = vmax.f32 %v4834_v55, %v574_v7 }
 0x15f   : > { %704 = vst.msk [vmem:[#allocation2 + $0x31] sm:$0xff] %vm226_vm1, %v671_v4 }
 0x160   : > { %702 = vst.msk [vmem:[#allocation2 + $0x19] sm:$0xff] %vm226_vm1, %v669_v50  ;;  %v580_v51 = vpop.permute.xlu1 %579 }
 0x161   : > { %v672_v8 = vmax.f32 %v4850_v1, %v580_v51  ;;  %v576_v12 = vpop.permute.xlu0 %575 }
 0x162   : > { %v670_v13 = vmax.f32 %v4854_v2, %v576_v12 }
 0x163   : > { %705 = vst.msk [vmem:[#allocation2 + $0x39] sm:$0xff] %vm226_vm1, %v672_v8 }
 0x164   : > { %703 = vst.msk [vmem:[#allocation2 + $0x21] sm:$0xff] %vm226_vm1, %v670_v13 }
 0x165   : > { %v582_v15 = vpop.permute.xlu0 %581 }
 0x166   : > { %v673_v53 = vmax.f32 %v4867_v6, %v582_v15  ;;  %v1928_v37 = vld [vmem:[#allocation2 + $0x31] sm:$0xff] }
 0x167   : > { %v584_v16 = vpop.permute.xlu1 %583  ;;  %v760_v21 = vld [vmem:[#allocation2 + $0x18] sm:$0xff] }
 0x168   : > { %706 = vst.msk [vmem:[#allocation2 + $0x49] sm:$0xff] %vm226_vm1, %v673_v53  ;;  %v674_v55 = vmax.f32 %v4872_v9, %v584_v16  ;;  %v1926_v29 = vld [vmem:[#allocation2 + $0x19] sm:$0xff]  ;;  %v762_v9 = vld [vmem:[#allocation2 + $0x30] sm:$0xff] }
 0x169   : > { %v586_v20 = vpop.permute.xlu0 %585 }
 0x16a   : > { %707 = vst.msk [vmem:[#allocation2 + $0x51] sm:$0xff] %vm226_vm1, %v674_v55  ;;  %v675_v1 = vmax.f32 %v4877_v10, %v586_v20  ;;  %v763_v23 = vld [vmem:[#allocation2 + $0x38] sm:$0xff] }
 0x16b   : > { %v1929_v2 = vld [vmem:[#allocation2 + $0x39] sm:$0xff]  ;;  %v588_v24 = vpop.permute.xlu1 %587  ;;  %v1927_v31 = vld [vmem:[#allocation2 + $0x21] sm:$0xff]  ;;  %v5037_v40 = vpack.c.bf16 %v763_v23, %v762_v9 }
 0x16c   : > { %v761_v28 = vld [vmem:[#allocation2 + $0x20] sm:$0xff]  ;;  %708 = vst.msk [vmem:[#allocation2 + $0x61] sm:$0xff] %vm226_vm1, %v675_v1  ;;  %v676_v6 = vmax.f32 %v4882_v11, %v588_v24  ;;  %v5035_v36 = vpack.c.bf16 %v1927_v31, %v1926_v29  ;;  %v5039_v10 = vpack.c.bf16 %v1929_v2, %v1928_v37 }
 0x16d   : > { %v5033_v32 = vpack.c.bf16 %v761_v28, %v760_v21  ;;  %v590_v39 = vpop.permute.xlu0 %589 }
 0x16e   : > { %709 = vst.msk [vmem:[#allocation2 + $0x69] sm:$0xff] %vm226_vm1, %v676_v6  ;;  %v677_v11 = vmax.f32 %v4887_v14, %v590_v39  ;;  %4160 = vmatprep.mubr.msk.bf16.mxu1 %vm226_vm1, %v5035_v36 }
 0x16f   : > { %4025 = vmatmul.mubr.msk.bf16.vlgmr.msra.gmra.mrb[32].mxu0 %vm226_vm1, %v5033_v32  ;;  %v592_v48 = vpop.permute.xlu1 %591  ;;  %4161 = vmatmul.mubr.msk.bf16.vlgmr.msra.gmra.mrb[0].mxu1 %vm226_vm1, %v5039_v10  ;;  %v1930_v57 = vld [vmem:[#allocation2 + $0x49] sm:$0xff] }
 0x170   : > { %4028 = vmatprep.mubr.msk.bf16.mxu0 %vm226_vm1, %v5037_v40  ;;  %710 = vst.msk [vmem:[#allocation2 + $0x79] sm:$0xff] %vm226_vm1, %v677_v11  ;;  %v678_v14 = vmax.f32 %v4892_v17, %v592_v48  ;;  %4193 = vmatpush3.bf16.msra.mxu1 %v2315_v44  ;;  %v764_v17 = vld [vmem:[#allocation2 + $0x48] sm:$0xff] }
 0x171   : > { %4057 = vmatpush3.bf16.msra.mxu0 %v1147_v45  ;;  %v594_v56 = vpop.permute.xlu0 %593  ;;  %v1931_v59 = vld [vmem:[#allocation2 + $0x51] sm:$0xff]  ;;  %4623 = vmatprep.subr.msk.bf16.mxu1 %vm376_vm0, %v5053_v47 }
 0x172   : > { %v765_v60 = vld [vmem:[#allocation2 + $0x50] sm:$0xff]  ;;  %4619 = vmatprep.subr.msk.bf16.mxu0 %vm376_vm0, %v5058_v5  ;;  %711 = vst.msk [vmem:[#allocation2 + $0x81] sm:$0xff] %vm226_vm1, %v678_v14  ;;  %v679_v0 = vmax.f32 %v4897_v18, %v594_v56  ;;  %v5072_v3 = vpack.c.bf16 %v1931_v59, %v1930_v57 }
 0x173   : > { %v596_v4 = vpop.permute.xlu1 %595  ;;  %v5078_v50 = vpack.c.bf16 %v765_v60, %v764_v17  ;;  %v766_v51 = vld [vmem:[#allocation2 + $0x60] sm:$0xff] }
 0x174   : > { %712 = vst.msk [vmem:[#allocation2 + $0x91] sm:$0xff] %vm226_vm1, %v679_v0  ;;  %v680_v7 = vmax.f32 %v4902_v19, %v596_v4  ;;  %4164 = vmatprep.mubr.msk.bf16.mxu1 %vm226_vm1, %v5072_v3  ;;  %v1932_v13 = vld [vmem:[#allocation2 + $0x61] sm:$0xff] }
 0x175   : > { %v598_v8 = vpop.permute.xlu0 %597  ;;  %v767_v12 = vld [vmem:[#allocation2 + $0x68] sm:$0xff] }
 0x176   : > { %v1933_v15 = vld [vmem:[#allocation2 + $0x69] sm:$0xff]  ;;  %713 = vst.msk [vmem:[#allocation2 + $0x99] sm:$0xff] %vm226_vm1, %v680_v7  ;;  %v681_v18 = vmax.f32 %v4907_v22, %v598_v8  ;;  %v5084_v53 = vpack.c.bf16 %v767_v12, %v766_v51 }
 0x177   : > { %4029 = vmatmul.mubr.msk.bf16.gmra.mrb[36].mxu0 %vm226_vm1, %v5078_v50  ;;  %v5086_v19 = vpack.c.bf16 %v1933_v15, %v1932_v13  ;;  %v600_v16 = vpop.permute.xlu1 %599  ;;  %v1934_v22 = vld [vmem:[#allocation2 + $0x79] sm:$0xff] }
 0x178   : > { %714 = vst.msk [vmem:[#allocation2 + $0xa9] sm:$0xff] %vm226_vm1, %v681_v18  ;;  %v682_v55 = vmax.f32 %v4912_v25, %v600_v16  ;;  %4032 = vmatprep.mubr.msk.bf16.mxu0 %vm226_vm1, %v5084_v53  ;;  %v768_v28 = vld [vmem:[#allocation2 + $0x78] sm:$0xff] }
 0x179   : > { %4165 = vmatmul.mubr.msk.bf16.gmra.mrb[4].mxu1 %vm226_vm1, %v5086_v19  ;;  %v602_v20 = vpop.permute.xlu0 %601  ;;  %v1935_v1 = vld [vmem:[#allocation2 + $0x81] sm:$0xff] }
 0x17a   : > { %v769_v21 = vld [vmem:[#allocation2 + $0x80] sm:$0xff]  ;;  %715 = vst.msk [vmem:[#allocation2 + $0xb1] sm:$0xff] %vm226_vm1, %v682_v55  ;;  %v683_v23 = vmax.f32 %v4917_v26, %v602_v20  ;;  %v5096_v2 = vpack.c.bf16 %v1935_v1, %v1934_v22 }
 0x17b   : > { %v604_v24 = vpop.permute.xlu1 %603  ;;  %v5102_v29 = vpack.c.bf16 %v769_v21, %v768_v28  ;;  %v770_v31 = vld [vmem:[#allocation2 + $0x90] sm:$0xff] }
 0x17c   : > { %716 = vst.msk [vmem:[#allocation2 + $0xc1] sm:$0xff] %vm226_vm1, %v683_v23  ;;  %v684_v25 = vmax.f32 %v4922_v27, %v604_v24  ;;  %4168 = vmatprep.mubr.msk.bf16.mxu1 %vm226_vm1, %v5096_v2  ;;  %v1936_v37 = vld [vmem:[#allocation2 + $0x91] sm:$0xff] }
 0x17d   : > { %v606_v6 = vpop.permute.xlu0 %605  ;;  %v771_v9 = vld [vmem:[#allocation2 + $0x98] sm:$0xff] }
 0x17e   : > { %v1937_v39 = vld [vmem:[#allocation2 + $0x99] sm:$0xff]  ;;  %717 = vst.msk [vmem:[#allocation2 + $0xc9] sm:$0xff] %vm226_vm1, %v684_v25  ;;  %v685_v26 = vmax.f32 %v4927_v30, %v606_v6  ;;  %v5108_v44 = vpack.c.bf16 %v771_v9, %v770_v31 }
 0x17f   : > { %4033 = vmatmul.mubr.msk.bf16.gmra.mrb[40].mxu0 %vm226_vm1, %v5102_v29  ;;  %v5110_v27 = vpack.c.bf16 %v1937_v39, %v1936_v37  ;;  %v608_v45 = vpop.permute.xlu1 %607  ;;  %v1938_v30 = vld [vmem:[#allocation2 + $0xa9] sm:$0xff] }
 0x180   : > { %718 = vst.msk [vmem:[#allocation2 + $0xd9] sm:$0xff] %vm226_vm1, %v685_v26  ;;  %v686_v11 = vmax.f32 %v4932_v33, %v608_v45  ;;  %4036 = vmatprep.mubr.msk.bf16.mxu0 %vm226_vm1, %v5108_v44  ;;  %v772_v0 = vld [vmem:[#allocation2 + $0xa8] sm:$0xff] }
 0x181   : > { %4169 = vmatmul.mubr.msk.bf16.gmra.mrb[8].mxu1 %vm226_vm1, %v5110_v27  ;;  %v610_v48 = vpop.permute.xlu0 %609  ;;  %v1939_v14 = vld [vmem:[#allocation2 + $0xb1] sm:$0xff] }
 0x182   : > { %v773_v56 = vld [vmem:[#allocation2 + $0xb0] sm:$0xff]  ;;  %719 = vst.msk [vmem:[#allocation2 + $0xe1] sm:$0xff] %vm226_vm1, %v686_v11  ;;  %v687_v57 = vmax.f32 %v4937_v34, %v610_v48  ;;  %v5120_v59 = vpack.c.bf16 %v1939_v14, %v1938_v30 }
 0x183   : > { %v612_v60 = vpop.permute.xlu1 %611  ;;  %v5126_v4 = vpack.c.bf16 %v773_v56, %v772_v0  ;;  %v774_v17 = vld [vmem:[#allocation2 + $0xc0] sm:$0xff] }
 0x184   : > { %720 = vst.msk [vmem:[#allocation2 + $0xf1] sm:$0xff] %vm226_vm1, %v687_v57  ;;  %v688_v33 = vmax.f32 %v4942_v35, %v612_v60  ;;  %4172 = vmatprep.mubr.msk.bf16.mxu1 %vm226_vm1, %v5120_v59  ;;  %v1940_v8 = vld [vmem:[#allocation2 + $0xc1] sm:$0xff] }
 0x185   : > { %v614_v7 = vpop.permute.xlu0 %613  ;;  %v775_v51 = vld [vmem:[#allocation2 + $0xc8] sm:$0xff] }
 0x186   : > { %v1941_v12 = vld [vmem:[#allocation2 + $0xc9] sm:$0xff]  ;;  %721 = vst.msk [vmem:[#allocation2 + $0xf9] sm:$0xff] %vm226_vm1, %v688_v33  ;;  %v689_v34 = vmax.f32 %v4947_v38, %v614_v7  ;;  %v5132_v13 = vpack.c.bf16 %v775_v51, %v774_v17 }
 0x187   : > { %4037 = vmatmul.mubr.msk.bf16.gmra.mrb[44].mxu0 %vm226_vm1, %v5126_v4  ;;  %v5134_v35 = vpack.c.bf16 %v1941_v12, %v1940_v8  ;;  %v616_v15 = vpop.permute.xlu1 %615  ;;  %v1942_v38 = vld [vmem:[#allocation2 + $0xd9] sm:$0xff] }
 0x188   : > { %722 = vst.msk [vmem:[#allocation2 + $0x109] sm:$0xff] %vm226_vm1, %v689_v34  ;;  %v690_v18 = vmax.f32 %v4952_v41, %v616_v15  ;;  %4040 = vmatprep.mubr.msk.bf16.mxu0 %vm226_vm1, %v5132_v13  ;;  %v776_v23 = vld [vmem:[#allocation2 + $0xd8] sm:$0xff] }
 0x189   : > { %4173 = vmatmul.mubr.msk.bf16.gmra.mrb[12].mxu1 %vm226_vm1, %v5134_v35  ;;  %v618_v16 = vpop.permute.xlu0 %617  ;;  %v1943_v55 = vld [vmem:[#allocation2 + $0xe1] sm:$0xff] }
 0x18a   : > { %v777_v20 = vld [vmem:[#allocation2 + $0xe0] sm:$0xff]  ;;  %723 = vst.msk [vmem:[#allocation2 + $0x111] sm:$0xff] %vm226_vm1, %v690_v18  ;;  %v691_v22 = vmax.f32 %v4957_v42, %v618_v16  ;;  %v5144_v1 = vpack.c.bf16 %v1943_v55, %v1942_v38 }
 0x18b   : > { %v620_v21 = vpop.permute.xlu1 %619  ;;  %v5150_v24 = vpack.c.bf16 %v777_v20, %v776_v23  ;;  %v778_v28 = vld [vmem:[#allocation2 + $0xf0] sm:$0xff] }
 0x18c   : > { %724 = vst.msk [vmem:[#allocation2 + $0x121] sm:$0xff] %vm226_vm1, %v691_v22  ;;  %v692_v41 = vmax.f32 %v4962_v43, %v620_v21  ;;  %4176 = vmatprep.mubr.msk.bf16.mxu1 %vm226_vm1, %v5144_v1  ;;  %v1944_v6 = vld [vmem:[#allocation2 + $0xf1] sm:$0xff] }
 0x18d   : > { %v622_v25 = vpop.permute.xlu0 %621  ;;  %v779_v31 = vld [vmem:[#allocation2 + $0xf8] sm:$0xff] }
 0x18e   : > { %v1945_v9 = vld [vmem:[#allocation2 + $0xf9] sm:$0xff]  ;;  %725 = vst.msk [vmem:[#allocation2 + $0x129] sm:$0xff] %vm226_vm1, %v692_v41  ;;  %v693_v42 = vmax.f32 %v4967_v46, %v622_v25  ;;  %v5156_v37 = vpack.c.bf16 %v779_v31, %v778_v28 }
 0x18f   : > { %4041 = vmatmul.mubr.msk.bf16.gmra.mrb[48].mxu0 %vm226_vm1, %v5150_v24  ;;  %v5158_v43 = vpack.c.bf16 %v1945_v9, %v1944_v6  ;;  %v624_v39 = vpop.permute.xlu1 %623  ;;  %v1946_v46 = vld [vmem:[#allocation2 + $0x109] sm:$0xff] }
 0x190   : > { %726 = vst.msk [vmem:[#allocation2 + $0x139] sm:$0xff] %vm226_vm1, %v693_v42  ;;  %v694_v26 = vmax.f32 %v4972_v49, %v624_v39  ;;  %4044 = vmatprep.mubr.msk.bf16.mxu0 %vm226_vm1, %v5156_v37  ;;  %v780_v57 = vld [vmem:[#allocation2 + $0x108] sm:$0xff] }
 0x191   : > { %4177 = vmatmul.mubr.msk.bf16.gmra.mrb[16].mxu1 %vm226_vm1, %v5158_v43  ;;  %v626_v45 = vpop.permute.xlu0 %625  ;;  %v1947_v11 = vld [vmem:[#allocation2 + $0x111] sm:$0xff]  ;;  %v1051_v6 = vld [vmem:[#allocation2 + $0x9] sm:$0xff] }
 0x192   : > { %v781_v48 = vld [vmem:[#allocation2 + $0x110] sm:$0xff]  ;;  %727 = vst.msk [vmem:[#allocation2 + $0x141] sm:$0xff] %vm226_vm1, %v694_v26  ;;  %v695_v30 = vmax.f32 %v4977_v52, %v626_v45  ;;  %v5168_v14 = vpack.c.bf16 %v1947_v11, %v1946_v46 }
 0x193   : > { %v628_v56 = vpop.permute.xlu1 %627  ;;  %v5174_v60 = vpack.c.bf16 %v781_v48, %v780_v57  ;;  %v782_v0 = vld [vmem:[#allocation2 + $0x120] sm:$0xff] }
 0x194   : > { %728 = vst.msk [vmem:[#allocation2 + $0x151] sm:$0xff] %vm226_vm1, %v695_v30  ;;  %v696_v49 = vmax.f32 %v4982_v54, %v628_v56  ;;  %4180 = vmatprep.mubr.msk.bf16.mxu1 %vm226_vm1, %v5168_v14  ;;  %v1948_v7 = vld [vmem:[#allocation2 + $0x121] sm:$0xff] }
 0x195   : > { %v630_v33 = vpop.permute.xlu0 %629  ;;  %v783_v17 = vld [vmem:[#allocation2 + $0x128] sm:$0xff]  ;;  %v2218_v48 = vld [vmem:[#allocation2 + $0x1a] sm:$0xff] }
 0x196   : > { %v1949_v51 = vld [vmem:[#allocation2 + $0x129] sm:$0xff]  ;;  %729 = vst.msk [vmem:[#allocation2 + $0x159] sm:$0xff] %vm226_vm1, %v696_v49  ;;  %v697_v52 = vmax.f32 %v4987_v58, %v630_v33  ;;  %v5180_v8 = vpack.c.bf16 %v783_v17, %v782_v0  ;;  %v2220_v33 = vld [vmem:[#allocation2 + $0x32] sm:$0xff]  ;;  %v2221_v17 = vld [vmem:[#allocation2 + $0x3a] sm:$0xff] }
 0x197   : > { %4045 = vmatmul.mubr.msk.bf16.gmra.mrb[52].mxu0 %vm226_vm1, %v5174_v60  ;;  %v5182_v54 = vpack.c.bf16 %v1949_v51, %v1948_v7  ;;  %v632_v12 = vpop.permute.xlu1 %631  ;;  %v1950_v58 = vld [vmem:[#allocation2 + $0x139] sm:$0xff]  ;;  %v2219_v30 = vld [vmem:[#allocation2 + $0x22] sm:$0xff]  ;;  %v2222_v7 = vld [vmem:[#allocation2 + $0x4a] sm:$0xff] }
 0x198   : > { %730 = vst.msk [vmem:[#allocation2 + $0x169] sm:$0xff] %vm226_vm1, %v697_v52  ;;  %v698_v34 = vmax.f32 %v4992_v61, %v632_v12  ;;  %4048 = vmatprep.mubr.msk.bf16.mxu0 %vm226_vm1, %v5180_v8  ;;  %v784_v22 = vld [vmem:[#allocation2 + $0x138] sm:$0xff]  ;;  %v5221_v0 = vpack.c.bf16 %v2219_v30, %v2218_v48  ;;  %v1439_v52 = vsel %vm376_vm0, %v5058_v5, 0  ;;  %v5233_v12 = vld [vmem:[%s5833_s3 + $0x6] sm:$0x3]  ;;  %v2238_v30 = vld [vmem:[#allocation2 + $0x10a] sm:$0xff] }
 0x199   : > { %4181 = vmatmul.mubr.msk.bf16.gmra.mrb[20].mxu1 %vm226_vm1, %v5182_v54  ;;  %v634_v15 = vpop.permute.xlu0 %633  ;;  %v1951_v18 = vld [vmem:[#allocation2 + $0x141] sm:$0xff]  ;;  %v2223_v51 = vld [vmem:[#allocation2 + $0x52] sm:$0xff]  ;;  %v5248_v5 = vld [vmem:[%s5833_s3 + $0xe] sm:$0x3] }
 0x19a   : > { %v785_v16 = vld [vmem:[#allocation2 + $0x140] sm:$0xff]  ;;  %731 = vst.msk [vmem:[#allocation2 + $0x171] sm:$0xff] %vm226_vm1, %v698_v34  ;;  %v699_v38 = vmax.f32 %v4999_v62, %v634_v15  ;;  %v5192_v55 = vpack.c.bf16 %v1951_v18, %v1950_v58  ;;  %v5237_v34 = vpack.c.bf16 %v2221_v17, %v2220_v33  ;;  %v2608_v15 = vsel %vm376_vm0, %v5053_v47, 0  ;;  %v2225_v47 = vld [vmem:[#allocation2 + $0x6a] sm:$0xff] }
 0x19b   : > { %v636_v20 = vpop.permute.xlu1 %635  ;;  %v5198_v21 = vpack.c.bf16 %v785_v16, %v784_v22  ;;  %v786_v23 = vld [vmem:[#allocation2 + $0x150] sm:$0xff]  ;;  %v5243_v58 = vpack.c.bf16 %v2223_v51, %v2222_v7  ;;  %v2226_v18 = vld [vmem:[#allocation2 + $0x7a] sm:$0xff]  ;;  %v2227_v16 = vld [vmem:[#allocation2 + $0x82] sm:$0xff] }
 0x19c   : > { %732 = vst.msk [vmem:[#allocation2 + $0x181] sm:$0xff] %vm226_vm1, %v699_v38  ;;  %v700_v61 = vmax.f32 %v5008_v63, %v636_v20  ;;  %4184 = vmatprep.mubr.msk.bf16.mxu1 %vm226_vm1, %v5192_v55  ;;  %v1952_v28 = vld [vmem:[#allocation2 + $0x151] sm:$0xff]  ;;  %v1050_v63 = vld [vmem:[#allocation2 + $0x1] sm:$0xff]  ;;  %v5264_v20 = vpack.c.bf16 %v2227_v16, %v2226_v18 }
 0x19d   : > { %v787_v41 = vld [vmem:[#allocation2 + $0x158] sm:$0xff]  ;;  %v1082_v46 = vpack.c.bf16 %v1051_v6, %v1050_v63  ;;  %v2232_v63 = vld [vmem:[#allocation2 + $0xc2] sm:$0xff]  ;;  %v2233_v6 = vld [vmem:[#allocation2 + $0xca] sm:$0xff] }
 0x19e   : > { %v1953_v25 = vld [vmem:[#allocation2 + $0x159] sm:$0xff]  ;;  %733 = vst.msk [vmem:[#allocation2 + $0x189] sm:$0xff] %vm226_vm1, %v700_v61  ;;  %v5203_v62 = vpack.c.bf16 %v787_v41, %v786_v23  ;;  %v2230_v23 = vld [vmem:[#allocation2 + $0xaa] sm:$0xff]  ;;  %v2240_v17 = vld [vmem:[#allocation2 + $0x122] sm:$0xff] }
 0x19f   : > { %4049 = vmatmul.mubr.msk.bf16.gmra.mrb[56].mxu0 %vm226_vm1, %v5198_v21  ;;  %v5205_v31 = vpack.c.bf16 %v1953_v25, %v1952_v28  ;;  %v1954_v9 = vld [vmem:[#allocation2 + $0x169] sm:$0xff]  ;;  %v2228_v22 = vld [vmem:[#allocation2 + $0x92] sm:$0xff]  ;;  %v2229_v61 = vld [vmem:[#allocation2 + $0x9a] sm:$0xff] }
 0x1a0   : > { %4052 = vmatprep.mubr.msk.bf16.mxu0 %vm226_vm1, %v5203_v62  ;;  %v788_v45 = vld [vmem:[#allocation2 + $0x168] sm:$0xff]  ;;  %v2231_v41 = vld [vmem:[#allocation2 + $0xb2] sm:$0xff]  ;;  %v5272_v28 = vpack.c.bf16 %v2229_v61, %v2228_v22  ;;  %v2237_v48 = vld [vmem:[#allocation2 + $0xfa] sm:$0xff] }
 0x1a1   : > { %4185 = vmatmul.mubr.msk.bf16.gmra.mrb[24].mxu1 %vm226_vm1, %v5205_v31  ;;  %v1955_v42 = vld [vmem:[#allocation2 + $0x171] sm:$0xff]  ;;  %v5276_v25 = vpack.c.bf16 %v2231_v41, %v2230_v23  ;;  %v2242_v51 = vld [vmem:[#allocation2 + $0x13a] sm:$0xff]  ;;  %v1342_v41 = vld [vmem:[#allocation2 + $0x2] sm:$0xff] }
 0x1a2   : > { %v789_v39 = vld [vmem:[#allocation2 + $0x170] sm:$0xff]  ;;  %v5211_v26 = vpack.c.bf16 %v1955_v42, %v1954_v9  ;;  %v2234_v9 = vld [vmem:[#allocation2 + $0xda] sm:$0xff]  ;;  %v2235_v42 = vld [vmem:[#allocation2 + $0xe2] sm:$0xff] }
 0x1a3   : > { %v5215_v11 = vpack.c.bf16 %v789_v39, %v788_v45  ;;  %v1956_v56 = vld [vmem:[#allocation2 + $0x181] sm:$0xff]  ;;  %v5284_v39 = vpack.c.bf16 %v2233_v6, %v2232_v63  ;;  %v5288_v45 = vpack.c.bf16 %v2235_v42, %v2234_v9  ;;  %v2241_v7 = vld [vmem:[#allocation2 + $0x12a] sm:$0xff]  ;;  %v2247_v22 = vld [vmem:[#allocation2 + $0x172] sm:$0xff] }
 0x1a4   : > { %4188 = vmatprep.mubr.msk.bf16.mxu1 %vm226_vm1, %v5211_v26  ;;  %v2245_v18 = vld [vmem:[#allocation2 + $0x15a] sm:$0xff]  ;;  %v2246_v16 = vld [vmem:[#allocation2 + $0x16a] sm:$0xff] }
 0x1a5   : > { %v1957_v57 = vld [vmem:[#allocation2 + $0x189] sm:$0xff]  ;;  %v5324_v23 = vpack.c.bf16 %v2247_v22, %v2246_v16 }
 0x1a6   : > { %v5219_v49 = vpack.c.bf16 %v1957_v57, %v1956_v56  ;;  %v2239_v56 = vld [vmem:[#allocation2 + $0x112] sm:$0xff]  ;;  %v1343_v63 = vld [vmem:[#allocation2 + $0xa] sm:$0xff]  ;;  %v2248_v6 = vld [vmem:[#allocation2 + $0x182] sm:$0xff] }
 0x1a7   : > { %4053 = vmatmul.mubr.msk.bf16.gmra.mrb[60].mxu0 %vm226_vm1, %v5215_v11  ;;  %v5300_v33 = vpack.c.bf16 %v2239_v56, %v2238_v30  ;;  %v2249_v9 = vld [vmem:[#allocation2 + $0x18a] sm:$0xff]  ;;  %v1374_v42 = vpack.c.bf16 %v1343_v63, %v1342_v41  ;;  %v2900_v30 = vsel %vm376_vm0, %v5248_v5, 0 }
 0x1a8   : > { %4058 = vmatprep.mubr.msk.bf16.mxu0 %vm226_vm1, %v1082_v46  ;;  %v2236_v46 = vld [vmem:[#allocation2 + $0xf2] sm:$0xff]  ;;  %v3668_v56 = vld [vmem:[%s5833_s3 + $0x10] sm:$0x3] }
 0x1a9   : > { %4189 = vmatmul.mubr.msk.bf16.gmra.mrb[28].mxu1 %vm226_vm1, %v5219_v49  ;;  %v5296_v57 = vpack.c.bf16 %v2237_v48, %v2236_v46  ;;  %v5332_v46 = vpack.c.bf16 %v2249_v9, %v2248_v6  ;;  %v1731_v48 = vsel %vm376_vm0, %v5233_v12, 0 }
 0x1aa   : > { %4194 = vmatprep.mubr.msk.bf16.mxu1 %vm226_vm1, %v5221_v0 }
 0x1af   : > { %4059 = vmatmul.mubr.msk.bf16.vlgmr.msra.gmra.mrb[32].mxu0 %vm226_vm1, %v5035_v36  ;;  %v2224_v36 = vld [vmem:[#allocation2 + $0x62] sm:$0xff] }
 0x1b0   : > { %4062 = vmatprep.mubr.msk.bf16.mxu0 %vm226_vm1, %v5039_v10  ;;  %4091 = vmatpush3.bf16.msra.mxu0 %v1439_v52  ;;  %v5260_v38 = vpack.c.bf16 %v2225_v47, %v2224_v36  ;;  %v2243_v52 = vld [vmem:[#allocation2 + $0x142] sm:$0xff]  ;;  %v2244_v47 = vld [vmem:[#allocation2 + $0x152] sm:$0xff] }
 0x1b1   : > { %4195 = vmatmul.mubr.msk.bf16.vlgmr.msra.gmra.mrb[0].mxu1 %vm226_vm1, %v5237_v34  ;;  %4620 = vmatprep.subr.msk.bf16.mxu0 %vm376_vm0, %v5233_v12  ;;  %v5312_v36 = vpack.c.bf16 %v2243_v52, %v2242_v51  ;;  %v5320_v61 = vpack.c.bf16 %v2245_v18, %v2244_v47  ;;  %v2539_v12 = vld [vmem:[#allocation2 + $0x180] sm:$0xff]  ;;  %v3192_v52 = vsel %vm376_vm0, %v3668_v56, 0 }
 0x1b2   : > { %4227 = vmatpush3.bf16.msra.mxu1 %v2608_v15  ;;  %4198 = vmatprep.mubr.msk.bf16.mxu1 %vm226_vm1, %v5243_v58  ;;  %v5308_v15 = vpack.c.bf16 %v2241_v7, %v2240_v17  ;;  %v2541_v17 = vld [vmem:[#allocation2 + $0x198] sm:$0xff]  ;;  %v2542_v7 = vld [vmem:[#allocation2 + $0x1a0] sm:$0xff] }
 0x1b3   : > { %4624 = vmatprep.subr.msk.bf16.mxu1 %vm376_vm0, %v5248_v5  ;;  %v2558_v51 = vpack.c.bf16 %v2542_v7, %v2541_v17 }
 0x1b7   : > { %4063 = vmatmul.mubr.msk.bf16.gmra.mrb[36].mxu0 %vm226_vm1, %v5072_v3 }
 0x1b8   : > { %4066 = vmatprep.mubr.msk.bf16.mxu0 %vm226_vm1, %v5086_v19 }
 0x1b9   : > { %4199 = vmatmul.mubr.msk.bf16.gmra.mrb[4].mxu1 %vm226_vm1, %v5260_v38 }
 0x1ba   : > { %4202 = vmatprep.mubr.msk.bf16.mxu1 %vm226_vm1, %v5264_v20 }
 0x1bf   : > { %4067 = vmatmul.mubr.msk.bf16.gmra.mrb[40].mxu0 %vm226_vm1, %v5096_v2 }
 0x1c0   : > { %4070 = vmatprep.mubr.msk.bf16.mxu0 %vm226_vm1, %v5110_v27 }
 0x1c1   : > { %4203 = vmatmul.mubr.msk.bf16.gmra.mrb[8].mxu1 %vm226_vm1, %v5272_v28 }
 0x1c2   : > { %4206 = vmatprep.mubr.msk.bf16.mxu1 %vm226_vm1, %v5276_v25 }
 0x1c7   : > { %4071 = vmatmul.mubr.msk.bf16.gmra.mrb[44].mxu0 %vm226_vm1, %v5120_v59 }
 0x1c8   : > { %4074 = vmatprep.mubr.msk.bf16.mxu0 %vm226_vm1, %v5134_v35 }
 0x1c9   : > { %4207 = vmatmul.mubr.msk.bf16.gmra.mrb[12].mxu1 %vm226_vm1, %v5284_v39 }
 0x1ca   : > { %4210 = vmatprep.mubr.msk.bf16.mxu1 %vm226_vm1, %v5288_v45 }
 0x1cf   : > { %4075 = vmatmul.mubr.msk.bf16.gmra.mrb[48].mxu0 %vm226_vm1, %v5144_v1 }
 0x1d0   : > { %4078 = vmatprep.mubr.msk.bf16.mxu0 %vm226_vm1, %v5158_v43 }
 0x1d1   : > { %4211 = vmatmul.mubr.msk.bf16.gmra.mrb[16].mxu1 %vm226_vm1, %v5296_v57 }
 0x1d2   : > { %4214 = vmatprep.mubr.msk.bf16.mxu1 %vm226_vm1, %v5300_v33 }
 0x1d7   : > { %4079 = vmatmul.mubr.msk.bf16.gmra.mrb[52].mxu0 %vm226_vm1, %v5168_v14 }
 0x1d8   : > { %4082 = vmatprep.mubr.msk.bf16.mxu0 %vm226_vm1, %v5182_v54 }
 0x1d9   : > { %4215 = vmatmul.mubr.msk.bf16.gmra.mrb[20].mxu1 %vm226_vm1, %v5308_v15 }
 0x1da   : > { %4218 = vmatprep.mubr.msk.bf16.mxu1 %vm226_vm1, %v5312_v36 }
 0x1df   : > { %4083 = vmatmul.mubr.msk.bf16.gmra.mrb[56].mxu0 %vm226_vm1, %v5192_v55 }
 0x1e0   : > { %4086 = vmatprep.mubr.msk.bf16.mxu0 %vm226_vm1, %v5205_v31 }
 0x1e1   : > { %4219 = vmatmul.mubr.msk.bf16.gmra.mrb[24].mxu1 %vm226_vm1, %v5320_v61 }
 0x1e2   : > { %4222 = vmatprep.mubr.msk.bf16.mxu1 %vm226_vm1, %v5324_v23 }
 0x1e7   : > { %4087 = vmatmul.mubr.msk.bf16.gmra.mrb[60].mxu0 %vm226_vm1, %v5211_v26 }
 0x1e8   : > { %4092 = vmatprep.mubr.msk.bf16.mxu0 %vm226_vm1, %v1374_v42 }
 0x1e9   : > { %4223 = vmatmul.mubr.msk.bf16.gmra.mrb[28].mxu1 %vm226_vm1, %v5332_v46 }
 0x1ea   : > { %4228 = vmatprep.mubr.msk.bf16.mxu1 %vm226_vm1, %v5037_v40 }
 0x1ef   : > { %4093 = vmatmul.mubr.msk.bf16.vlgmr.msra.gmra.mrb[32].mxu0 %vm226_vm1, %v5221_v0  ;;  %v2540_v0 = vld [vmem:[#allocation2 + $0x188] sm:$0xff] }
 0x1f0   : > { %4096 = vmatprep.mubr.msk.bf16.mxu0 %vm226_vm1, %v5237_v34  ;;  %4125 = vmatpush3.bf16.msra.mxu0 %v1731_v48  ;;  %v2557_v5 = vpack.c.bf16 %v2540_v0, %v2539_v12 }
 0x1f1   : > { %4229 = vmatmul.mubr.msk.bf16.vlgmr.msra.gmra.mrb[0].mxu1 %vm226_vm1, %v5078_v50 }
 0x1f2   : > { %4261 = vmatpush3.bf16.msra.mxu1 %v2900_v30  ;;  %4232 = vmatprep.mubr.msk.bf16.mxu1 %vm226_vm1, %v5084_v53 }
 0x1f3   : > { %4625 = vmatprep.subr.msk.bf16.mxu1 %vm376_vm0, %v3668_v56 }
 0x1f7   : > { %4097 = vmatmul.mubr.msk.bf16.gmra.mrb[36].mxu0 %vm226_vm1, %v5243_v58 }
 0x1f8   : > { %4100 = vmatprep.mubr.msk.bf16.mxu0 %vm226_vm1, %v5260_v38 }
 0x1f9   : > { %4233 = vmatmul.mubr.msk.bf16.gmra.mrb[4].mxu1 %vm226_vm1, %v5102_v29 }
 0x1fa   : > { %4236 = vmatprep.mubr.msk.bf16.mxu1 %vm226_vm1, %v5108_v44 }
 0x1ff   : > { %4101 = vmatmul.mubr.msk.bf16.gmra.mrb[40].mxu0 %vm226_vm1, %v5264_v20 }
 0x200   : > { %4104 = vmatprep.mubr.msk.bf16.mxu0 %vm226_vm1, %v5272_v28 }
 0x201   : > { %4237 = vmatmul.mubr.msk.bf16.gmra.mrb[8].mxu1 %vm226_vm1, %v5126_v4 }
 0x202   : > { %4240 = vmatprep.mubr.msk.bf16.mxu1 %vm226_vm1, %v5132_v13 }
 0x207   : > { %4105 = vmatmul.mubr.msk.bf16.gmra.mrb[44].mxu0 %vm226_vm1, %v5276_v25 }
 0x208   : > { %4108 = vmatprep.mubr.msk.bf16.mxu0 %vm226_vm1, %v5284_v39 }
 0x209   : > { %4241 = vmatmul.mubr.msk.bf16.gmra.mrb[12].mxu1 %vm226_vm1, %v5150_v24 }
 0x20a   : > { %4244 = vmatprep.mubr.msk.bf16.mxu1 %vm226_vm1, %v5156_v37 }
 0x20f   : > { %4109 = vmatmul.mubr.msk.bf16.gmra.mrb[48].mxu0 %vm226_vm1, %v5288_v45 }
 0x210   : > { %4112 = vmatprep.mubr.msk.bf16.mxu0 %vm226_vm1, %v5296_v57 }
 0x211   : > { %4245 = vmatmul.mubr.msk.bf16.gmra.mrb[16].mxu1 %vm226_vm1, %v5174_v60 }
 0x212   : > { %4248 = vmatprep.mubr.msk.bf16.mxu1 %vm226_vm1, %v5180_v8 }
 0x217   : > { %4113 = vmatmul.mubr.msk.bf16.gmra.mrb[52].mxu0 %vm226_vm1, %v5300_v33 }
 0x218   : > { %4116 = vmatprep.mubr.msk.bf16.mxu0 %vm226_vm1, %v5308_v15 }
 0x219   : > { %4249 = vmatmul.mubr.msk.bf16.gmra.mrb[20].mxu1 %vm226_vm1, %v5198_v21 }
 0x21a   : > { %4252 = vmatprep.mubr.msk.bf16.mxu1 %vm226_vm1, %v5203_v62 }
 0x21f   : > { %4117 = vmatmul.mubr.msk.bf16.gmra.mrb[56].mxu0 %vm226_vm1, %v5312_v36 }
 0x220   : > { %4120 = vmatprep.mubr.msk.bf16.mxu0 %vm226_vm1, %v5320_v61 }
 0x221   : > { %4253 = vmatmul.mubr.msk.bf16.gmra.mrb[24].mxu1 %vm226_vm1, %v5215_v11 }
 0x222   : > { %4256 = vmatprep.mubr.msk.bf16.mxu1 %vm226_vm1, %v2557_v5 }
 0x227   : > { %4121 = vmatmul.mubr.msk.bf16.gmra.mrb[60].mxu0 %vm226_vm1, %v5324_v23 }
 0x228   : > { %4126 = vmatprep.mubr.msk.bf16.mxu0 %vm226_vm1, %v5033_v32  ;;  %v2833_v32 = vld [vmem:[#allocation2 + $0x199] sm:$0xff] }
 0x229   : > { %4257 = vmatmul.mubr.msk.bf16.gmra.mrb[28].mxu1 %vm226_vm1, %v2558_v51 }
 0x22a   : > { %4262 = vmatprep.mubr.msk.bf16.mxu1 %vm226_vm1, %v5039_v10 }
 0x22f   : > { %4127 = vmatmul.mubr.msk.bf16.vlgmr.msra.gmra.mrb[32].mxu0 %vm226_vm1, %v5037_v40  ;;  %v2834_v40 = vld [vmem:[#allocation2 + $0x1a1] sm:$0xff] }
 0x230   : > { %4130 = vmatprep.mubr.msk.bf16.mxu0 %vm226_vm1, %v5078_v50  ;;  %v2850_v10 = vpack.c.bf16 %v2834_v40, %v2833_v32  ;;  %v3126_v50 = vld [vmem:[#allocation2 + $0x1a2] sm:$0xff] }
 0x231   : > { %4263 = vmatmul.mubr.msk.bf16.vlgmr.msra.gmra.mrb[0].mxu1 %vm226_vm1, %v5072_v3  ;;  %v3125_v3 = vld [vmem:[#allocation2 + $0x19a] sm:$0xff] }
 0x232   : > { %4295 = vmatpush3.bf16.msra.mxu1 %v3192_v52  ;;  %4266 = vmatprep.mubr.msk.bf16.mxu1 %vm226_vm1, %v5086_v19 }
 0x237   : > { %4131 = vmatmul.mubr.msk.bf16.gmra.mrb[36].mxu0 %vm226_vm1, %v5084_v53  ;;  %v3142_v53 = vpack.c.bf16 %v3126_v50, %v3125_v3 }
 0x238   : > { %4134 = vmatprep.mubr.msk.bf16.mxu0 %vm226_vm1, %v5102_v29 }
 0x239   : > { %4267 = vmatmul.mubr.msk.bf16.gmra.mrb[4].mxu1 %vm226_vm1, %v5096_v2 }
 0x23a   : > { %4270 = vmatprep.mubr.msk.bf16.mxu1 %vm226_vm1, %v5110_v27 }
 0x23f   : > { %4135 = vmatmul.mubr.msk.bf16.gmra.mrb[40].mxu0 %vm226_vm1, %v5108_v44 }
 0x240   : > { %4138 = vmatprep.mubr.msk.bf16.mxu0 %vm226_vm1, %v5126_v4 }
 0x241   : > { %4271 = vmatmul.mubr.msk.bf16.gmra.mrb[8].mxu1 %vm226_vm1, %v5120_v59 }
 0x242   : > { %4274 = vmatprep.mubr.msk.bf16.mxu1 %vm226_vm1, %v5134_v35 }
 0x247   : > { %4139 = vmatmul.mubr.msk.bf16.gmra.mrb[44].mxu0 %vm226_vm1, %v5132_v13 }
 0x248   : > { %4142 = vmatprep.mubr.msk.bf16.mxu0 %vm226_vm1, %v5150_v24 }
 0x249   : > { %4275 = vmatmul.mubr.msk.bf16.gmra.mrb[12].mxu1 %vm226_vm1, %v5144_v1 }
 0x24a   : > { %4278 = vmatprep.mubr.msk.bf16.mxu1 %vm226_vm1, %v5158_v43 }
 0x24f   : > { %4143 = vmatmul.mubr.msk.bf16.gmra.mrb[48].mxu0 %vm226_vm1, %v5156_v37 }
 0x250   : > { %4146 = vmatprep.mubr.msk.bf16.mxu0 %vm226_vm1, %v5174_v60 }
 0x251   : > { %4279 = vmatmul.mubr.msk.bf16.gmra.mrb[16].mxu1 %vm226_vm1, %v5168_v14 }
 0x252   : > { %4282 = vmatprep.mubr.msk.bf16.mxu1 %vm226_vm1, %v5182_v54 }
 0x257   : > { %4147 = vmatmul.mubr.msk.bf16.gmra.mrb[52].mxu0 %vm226_vm1, %v5180_v8 }
 0x258   : > { %4150 = vmatprep.mubr.msk.bf16.mxu0 %vm226_vm1, %v5198_v21 }
 0x259   : > { %4283 = vmatmul.mubr.msk.bf16.gmra.mrb[20].mxu1 %vm226_vm1, %v5192_v55 }
 0x25a   : > { %4286 = vmatprep.mubr.msk.bf16.mxu1 %vm226_vm1, %v5205_v31 }
 0x25f   : > { %4151 = vmatmul.mubr.msk.bf16.gmra.mrb[56].mxu0 %vm226_vm1, %v5203_v62 }
 0x260   : > { %4154 = vmatprep.mubr.msk.bf16.mxu0 %vm226_vm1, %v5215_v11 }
 0x261   : > { %4287 = vmatmul.mubr.msk.bf16.gmra.mrb[24].mxu1 %vm226_vm1, %v5211_v26 }
 0x262   : > { %4290 = vmatprep.mubr.msk.bf16.mxu1 %vm226_vm1, %v5219_v49 }
 0x267   : > { %4155 = vmatmul.mubr.msk.bf16.gmra.mrb[60].mxu0 %vm226_vm1, %v2557_v5 }
 0x269   : > { %4291 = vmatmul.mubr.msk.bf16.gmra.mrb[28].mxu1 %vm226_vm1, %v2850_v10 }
 0x26a   : > { %4296 = vmatprep.mubr.msk.bf16.mxu1 %vm226_vm1, %v5237_v34 }
 0x271   : > { %4297 = vmatmul.mubr.msk.bf16.vlgmr.msra.gmra.mrb[0].mxu1 %vm226_vm1, %v5243_v58 }
 0x272   : > { %4300 = vmatprep.mubr.msk.bf16.mxu1 %vm226_vm1, %v5260_v38 }
 0x279   : > { %4301 = vmatmul.mubr.msk.bf16.gmra.mrb[4].mxu1 %vm226_vm1, %v5264_v20 }
 0x27a   : > { %4304 = vmatprep.mubr.msk.bf16.mxu1 %vm226_vm1, %v5272_v28 }
 0x281   : > { %4305 = vmatmul.mubr.msk.bf16.gmra.mrb[8].mxu1 %vm226_vm1, %v5276_v25 }
 0x282   : > { %4308 = vmatprep.mubr.msk.bf16.mxu1 %vm226_vm1, %v5284_v39 }
 0x289   : > { %4309 = vmatmul.mubr.msk.bf16.gmra.mrb[12].mxu1 %vm226_vm1, %v5288_v45 }
 0x28a   : > { %4312 = vmatprep.mubr.msk.bf16.mxu1 %vm226_vm1, %v5296_v57  ;;  %v5542_v57 = vld [vmem:[%s5834_s4] ss:$0 sm:$0xff] }
 0x291   : > { %4313 = vmatmul.mubr.msk.bf16.gmra.mrb[16].mxu1 %vm226_vm1, %v5300_v33 }
 0x292   : > { %4316 = vmatprep.mubr.msk.bf16.mxu1 %vm226_vm1, %v5308_v15 }
 0x299   : > { %4317 = vmatmul.mubr.msk.bf16.gmra.mrb[20].mxu1 %vm226_vm1, %v5312_v36 }
 0x29a   : > { %4320 = vmatprep.mubr.msk.bf16.mxu1 %vm226_vm1, %v5320_v61 }
 0x2a1   : > { %4321 = vmatmul.mubr.msk.bf16.gmra.mrb[24].mxu1 %vm226_vm1, %v5324_v23 }
 0x2a2   : > { %4324 = vmatprep.mubr.msk.bf16.mxu1 %vm226_vm1, %v5332_v46 }
 0x2a9   : > { %4325 = vmatmul.mubr.msk.bf16.gmra.mrb[28].mxu1 %vm226_vm1, %v3142_v53 }
 0x302   : > { %v4128_v19 = vpop.f32.mrb[32].mxu0 }
 0x303   : > { %v1767_v2 = vpop.f32.mrb[33].mxu0  ;;  %v4328_v33 = vadd.f32 %v4128_v19, %v5542_v57 }
 0x304   : > { %v4129_v29 = vpop.f32.mrb[34].mxu0  ;;  %v4330_v15 = vadd.f32 %v5542_v57, %v1767_v2 }
 0x305   : > { %v1770_v44 = vpop.f32.mrb[35].mxu0  ;;  %v4332_v47 = vadd.f32 %v4129_v29, %v5542_v57 }
 0x306   : > { %v4334_v22 = vadd.f32 %v5542_v57, %v1770_v44 }
 0x30a   : > { %v4132_v27 = vpop.f32.mrb[36].mxu0 }
 0x30b   : > { %v1783_v59 = vpop.f32.mrb[37].mxu0  ;;  %v4336_v9 = vadd.f32 %v4132_v27, %v5542_v57 }
 0x30c   : > { %v4133_v4 = vpop.f32.mrb[38].mxu0  ;;  %v4338_v42 = vadd.f32 %v5542_v57, %v1783_v59 }
 0x30d   : > { %v1786_v13 = vpop.f32.mrb[39].mxu0  ;;  %v4340_v48 = vadd.f32 %v4133_v4, %v5542_v57 }
 0x30e   : > { %v4342_v0 = vadd.f32 %v5542_v57, %v1786_v13 }
 0x312   : > { %v4136_v35 = vpop.f32.mrb[40].mxu0 }
 0x313   : > { %v1799_v1 = vpop.f32.mrb[41].mxu0  ;;  %v4344_v52 = vadd.f32 %v4136_v35, %v5542_v57 }
 0x314   : > { %v4137_v24 = vpop.f32.mrb[42].mxu0  ;;  %v4346_v32 = vadd.f32 %v5542_v57, %v1799_v1 }
 0x315   : > { %v1802_v37 = vpop.f32.mrb[43].mxu0  ;;  %v4348_v10 = vadd.f32 %v4137_v24, %v5542_v57 }
 0x316   : > { %v4350_v53 = vadd.f32 %v5542_v57, %v1802_v37 }
 0x31a   : > { %v5499_v43 = vpop.f32.mrb[44].mxu0 }
 0x31b   : > { %v5501_v14 = vpop.f32.mrb[45].mxu0  ;;  %v4352_v59 = vadd.f32 %v5499_v43, %v5542_v57 }
 0x31c   : > { %v5503_v60 = vpop.f32.mrb[46].mxu0  ;;  %v4354_v4 = vadd.f32 %v5542_v57, %v5501_v14 }
 0x31d   : > { %v5505_v8 = vpop.f32.mrb[47].mxu0  ;;  %v4356_v35 = vadd.f32 %v5503_v60, %v5542_v57 }
 0x31e   : > { %v4358_v37 = vadd.f32 %v5542_v57, %v5505_v8 }
 0x322   : > { %v5507_v54 = vpop.f32.mrb[48].mxu0 }
 0x323   : > { %v5509_v55 = vpop.f32.mrb[49].mxu0  ;;  %v4360_v60 = vadd.f32 %v5507_v54, %v5542_v57 }
 0x324   : > { %v5511_v21 = vpop.f32.mrb[50].mxu0  ;;  %v4362_v8 = vadd.f32 %v5542_v57, %v5509_v55 }
 0x325   : > { %v5513_v62 = vpop.f32.mrb[51].mxu0 }
 0x32a   : > { %v5515_v31 = vpop.f32.mrb[52].mxu0 }
 0x32b   : > { %v5517_v26 = vpop.f32.mrb[53].mxu0 }
 0x32c   : > { %v5519_v11 = vpop.f32.mrb[54].mxu0 }
 0x32d   : > { %v5521_v49 = vpop.f32.mrb[55].mxu0 }
 0x332   : > { %v5523_v34 = vpop.f32.mrb[56].mxu0 }
 0x333   : > { %v5525_v58 = vpop.f32.mrb[57].mxu0 }
 0x334   : > { %v5527_v38 = vpop.f32.mrb[58].mxu0 }
 0x335   : > { %v5529_v20 = vpop.f32.mrb[59].mxu0 }
 0x33a   : > { %v5531_v28 = vpop.f32.mrb[60].mxu0 }
 0x33b   : > { %v5533_v25 = vpop.f32.mrb[61].mxu0 }
 0x33c   : > { %v5535_v39 = vpop.f32.mrb[62].mxu0 }
 0x33d   : > { %v5537_v45 = vpop.f32.mrb[63].mxu0 }
 0x344   : > { %v4298_v36 = vpop.f32.mrb[0].mxu1 }
 0x345   : > { %v5547_v18 = vadd.f32 %v4328_v33, %v4298_v36  ;;  %v3228_v16 = vpop.f32.mrb[1].mxu1 }
 0x346   : > { %v5550_v61 = vadd.f32 %v4330_v15, %v3228_v16  ;;  %v4299_v23 = vpop.f32.mrb[2].mxu1  ;;  %v4364_v16 = vadd.f32 %v5511_v21, %v5542_v57  ;;  %v4368_v21 = vadd.f32 %v5515_v31, %v5542_v57 }
 0x347   : > { %v5552_v41 = vadd.f32 %v4332_v47, %v4299_v23  ;;  %3423 = vrot.lane.b32.xlu0 %v5547_v18, %s4647_s27  ;;  %v3231_v63 = vpop.f32.mrb[3].mxu1 }
 0x348   : > { %v5556_v6 = vadd.f32 %v4334_v22, %v3231_v63  ;;  %v4366_v63 = vadd.f32 %v5542_v57, %v5513_v62  ;;  %v4370_v62 = vadd.f32 %v5542_v57, %v5517_v26 }
 0x349   : > { %3425 = vrot.lane.b32.xlu1 %v5552_v41, %s4647_s27 }
 0x34b   : > { %3419 = vrot.lane.b32.xlu0 %v5550_v61, %s4647_s27 }
 0x34c   : > { %v4302_v46 = vpop.f32.mrb[4].mxu1 }
 0x34d   : > { %v5565_v30 = vadd.f32 %v4336_v9, %v4302_v46  ;;  %3421 = vrot.lane.b32.xlu1 %v5556_v6, %s4647_s27  ;;  %v3244_v56 = vpop.f32.mrb[5].mxu1 }
 0x34e   : > { %v5570_v12 = vadd.f32 %v4338_v42, %v3244_v56  ;;  %v4303_v5 = vpop.f32.mrb[6].mxu1  ;;  %v4372_v56 = vadd.f32 %v5519_v11, %v5542_v57  ;;  %v4376_v11 = vadd.f32 %v5523_v34, %v5542_v57 }
 0x34f   : > { %v5572_v17 = vadd.f32 %v4340_v48, %v4303_v5  ;;  %3431 = vrot.lane.b32.xlu0 %v5565_v30, %s4647_s27  ;;  %v3247_v7 = vpop.f32.mrb[7].mxu1 }
 0x350   : > { %v5576_v51 = vadd.f32 %v4342_v0, %v3247_v7  ;;  %v4374_v7 = vadd.f32 %v5542_v57, %v5521_v49  ;;  %v4378_v49 = vadd.f32 %v5542_v57, %v5525_v58 }
 0x351   : > { %3433 = vrot.lane.b32.xlu1 %v5572_v17, %s4647_s27 }
 0x353   : > { %3427 = vrot.lane.b32.xlu0 %v5570_v12, %s4647_s27 }
 0x354   : > { %v4306_v40 = vpop.f32.mrb[8].mxu1 }
 0x355   : > { %v5585_v3 = vadd.f32 %v4344_v52, %v4306_v40  ;;  %3429 = vrot.lane.b32.xlu1 %v5576_v51, %s4647_s27  ;;  %v3260_v50 = vpop.f32.mrb[9].mxu1 }
 0x356   : > { %v5590_v19 = vadd.f32 %v4346_v32, %v3260_v50  ;;  %v4307_v2 = vpop.f32.mrb[10].mxu1  ;;  %v4380_v50 = vadd.f32 %v5527_v38, %v5542_v57  ;;  %v4384_v38 = vadd.f32 %v5531_v28, %v5542_v57  ;;  %v4390_v28 = vadd.f32 %v5542_v57, %v5537_v45 }
 0x357   : > { %v5592_v29 = vadd.f32 %v4348_v10, %v4307_v2  ;;  %3439 = vrot.lane.b32.xlu0 %v5585_v3, %s4647_s27  ;;  %v3263_v44 = vpop.f32.mrb[11].mxu1 }
 0x358   : > { %v5596_v27 = vadd.f32 %v4350_v53, %v3263_v44  ;;  %v4382_v44 = vadd.f32 %v5542_v57, %v5529_v20  ;;  %v4386_v20 = vadd.f32 %v5542_v57, %v5533_v25 }
 0x359   : > { %3441 = vrot.lane.b32.xlu1 %v5592_v29, %s4647_s27 }
 0x35b   : > { %3435 = vrot.lane.b32.xlu0 %v5590_v19, %s4647_s27 }
 0x35c   : > { %v4310_v13 = vpop.f32.mrb[12].mxu1 }
 0x35d   : > { %v5608_v1 = vadd.f32 %v4352_v59, %v4310_v13  ;;  %3437 = vrot.lane.b32.xlu1 %v5596_v27, %s4647_s27  ;;  %v3276_v24 = vpop.f32.mrb[13].mxu1 }
 0x35e   : > { %v5614_v43 = vadd.f32 %v4354_v4, %v3276_v24  ;;  %v4311_v33 = vpop.f32.mrb[14].mxu1  ;;  %v4388_v24 = vadd.f32 %v5535_v39, %v5542_v57 }
 0x35f   : > { %v5616_v15 = vadd.f32 %v4356_v35, %v4311_v33  ;;  %3447 = vrot.lane.b32.xlu0 %v5608_v1, %s4647_s27  ;;  %v3279_v14 = vpop.f32.mrb[15].mxu1 }
 0x360   : > { %v5620_v36 = vadd.f32 %v4358_v37, %v3279_v14 }
 0x361   : > { %3449 = vrot.lane.b32.xlu1 %v5616_v15, %s4647_s27 }
 0x363   : > { %3443 = vrot.lane.b32.xlu0 %v5614_v43, %s4647_s27 }
 0x364   : > { %v4314_v47 = vpop.f32.mrb[16].mxu1 }
 0x365   : > { %v5632_v22 = vadd.f32 %v4360_v60, %v4314_v47  ;;  %3445 = vrot.lane.b32.xlu1 %v5620_v36, %s4647_s27  ;;  %v3292_v23 = vpop.f32.mrb[17].mxu1 }
 0x366   : > { %v5638_v54 = vadd.f32 %v4362_v8, %v3292_v23  ;;  %v4315_v9 = vpop.f32.mrb[18].mxu1 }
 0x367   : > { %v5640_v42 = vadd.f32 %v4364_v16, %v4315_v9  ;;  %3455 = vrot.lane.b32.xlu0 %v5632_v22, %s4647_s27  ;;  %v3295_v55 = vpop.f32.mrb[19].mxu1 }
 0x368   : > { %v5644_v46 = vadd.f32 %v4366_v63, %v3295_v55 }
 0x369   : > { %3457 = vrot.lane.b32.xlu1 %v5640_v42, %s4647_s27 }
 0x36b   : > { %3451 = vrot.lane.b32.xlu0 %v5638_v54, %s4647_s27 }
 0x36c   : > { %v4318_v48 = vpop.f32.mrb[20].mxu1 }
 0x36d   : > { %v5656_v0 = vadd.f32 %v4368_v21, %v4318_v48  ;;  %3453 = vrot.lane.b32.xlu1 %v5644_v46, %s4647_s27  ;;  %v3308_v5 = vpop.f32.mrb[21].mxu1 }
 0x36e   : > { %v5662_v31 = vadd.f32 %v4370_v62, %v3308_v5  ;;  %v4319_v52 = vpop.f32.mrb[22].mxu1 }
 0x36f   : > { %v5664_v32 = vadd.f32 %v4372_v56, %v4319_v52  ;;  %3463 = vrot.lane.b32.xlu0 %v5656_v0, %s4647_s27  ;;  %v3311_v26 = vpop.f32.mrb[23].mxu1 }
 0x370   : > { %v5668_v40 = vadd.f32 %v4374_v7, %v3311_v26 }
 0x371   : > { %3465 = vrot.lane.b32.xlu1 %v5664_v32, %s4647_s27 }
 0x373   : > { %3459 = vrot.lane.b32.xlu0 %v5662_v31, %s4647_s27 }
 0x374   : > { %v4322_v10 = vpop.f32.mrb[24].mxu1 }
 0x375   : > { %v5680_v53 = vadd.f32 %v4376_v11, %v4322_v10  ;;  %3461 = vrot.lane.b32.xlu1 %v5668_v40, %s4647_s27  ;;  %v3324_v2 = vpop.f32.mrb[25].mxu1 }
 0x376   : > { %v5686_v34 = vadd.f32 %v4378_v49, %v3324_v2  ;;  %v4323_v59 = vpop.f32.mrb[26].mxu1 }
 0x377   : > { %v5688_v4 = vadd.f32 %v4380_v50, %v4323_v59  ;;  %3471 = vrot.lane.b32.xlu0 %v5680_v53, %s4647_s27  ;;  %v3327_v58 = vpop.f32.mrb[27].mxu1 }
 0x378   : > { %v5692_v13 = vadd.f32 %v4382_v44, %v3327_v58 }
 0x379   : > { %3473 = vrot.lane.b32.xlu1 %v5688_v4, %s4647_s27 }
 0x37b   : > { %3467 = vrot.lane.b32.xlu0 %v5686_v34, %s4647_s27 }
 0x37c   : > { %v4326_v35 = vpop.f32.mrb[28].mxu1 }
 0x37d   : > { %v5704_v37 = vadd.f32 %v4384_v38, %v4326_v35  ;;  %3469 = vrot.lane.b32.xlu1 %v5692_v13, %s4647_s27  ;;  %v3340_v33 = vpop.f32.mrb[29].mxu1 }
 0x37e   : > { %v5710_v14 = vadd.f32 %v4386_v20, %v3340_v33  ;;  %v4327_v60 = vpop.f32.mrb[30].mxu1 }
 0x37f   : > { %v5712_v8 = vadd.f32 %v4388_v24, %v4327_v60  ;;  %v3343_v25 = vpop.f32.mrb[31].mxu1 }
 0x380   : > { %v5714_v47 = vadd.f32 %v4390_v28, %v3343_v25  ;;  %3475 = vrot.lane.b32.xlu0 %v5710_v14, %s4647_s27 }
 0x382   : > { %3477 = vrot.lane.b32.xlu1 %v5714_v47, %s4647_s27 }
 0x384   : > { %3479 = vrot.lane.b32.xlu0 %v5704_v37, %s4647_s27 }
 0x386   : > { %3481 = vrot.lane.b32.xlu1 %v5712_v8, %s4647_s27 }
 0x3b9   : > { %v3424_v39 = vpop.permute.xlu0 %3423 }
 0x3ba   : > { %v3517_v45 = vmax.f32 %v5547_v18, %v3424_v39 }
 0x3bb   : > { %v3426_v57 = vpop.permute.xlu1 %3425 }
 0x3bc   : > { %3550 = vst.msk [vmem:[%s5729_s30 + $0x10] sm:$0xff] %vm3547_vm4, %v3517_v45  ;;  %v3518_v16 = vmax.f32 %v5552_v41, %v3426_v57 }
 0x3bd   : > { %v3420_v23 = vpop.permute.xlu0 %3419 }
 0x3be   : > { %3551 = vst.msk [vmem:[%s5729_s30 + $0x18] sm:$0xff] %vm3547_vm4, %v3518_v16  ;;  %v3515_v63 = vmax.f32 %v5550_v61, %v3420_v23 }
 0x3bf   : > { %v3422_v9 = vpop.permute.xlu1 %3421 }
 0x3c0   : > { %3548 = vst.msk [vmem:[%s5729_s30] sm:$0xff] %vm3547_vm4, %v3515_v63  ;;  %v3516_v55 = vmax.f32 %v5556_v6, %v3422_v9 }
 0x3c1   : > { %v3432_v21 = vpop.permute.xlu0 %3431 }
 0x3c2   : > { %3549 = vst.msk [vmem:[%s5729_s30 + $0x8] sm:$0xff] %vm3547_vm4, %v3516_v55  ;;  %v3521_v18 = vmax.f32 %v5565_v30, %v3432_v21 }
 0x3c3   : > { %v3434_v62 = vpop.permute.xlu1 %3433 }
 0x3c4   : > { %3554 = vst.msk [vmem:[%s5729_s30 + $0x30] sm:$0xff] %vm3547_vm4, %v3521_v18  ;;  %v3522_v41 = vmax.f32 %v5572_v17, %v3434_v62 }
 0x3c5   : > { %v3428_v48 = vpop.permute.xlu0 %3427 }
 0x3c6   : > { %3555 = vst.msk [vmem:[%s5729_s30 + $0x38] sm:$0xff] %vm3547_vm4, %v3522_v41  ;;  %v3519_v61 = vmax.f32 %v5570_v12, %v3428_v48 }
 0x3c7   : > { %v3430_v56 = vpop.permute.xlu1 %3429 }
 0x3c8   : > { %3552 = vst.msk [vmem:[%s5729_s30 + $0x20] sm:$0xff] %vm3547_vm4, %v3519_v61  ;;  %v3520_v6 = vmax.f32 %v5576_v51, %v3430_v56 }
 0x3c9   : > { %v3440_v5 = vpop.permute.xlu0 %3439 }
 0x3ca   : > { %3553 = vst.msk [vmem:[%s5729_s30 + $0x28] sm:$0xff] %vm3547_vm4, %v3520_v6  ;;  %v3525_v30 = vmax.f32 %v5585_v3, %v3440_v5 }
 0x3cb   : > { %v3442_v7 = vpop.permute.xlu1 %3441 }
 0x3cc   : > { %3558 = vst.msk [vmem:[%s5729_s30 + $0x50] sm:$0xff] %vm3547_vm4, %v3525_v30  ;;  %v3526_v17 = vmax.f32 %v5592_v29, %v3442_v7 }
 0x3cd   : > { %v3436_v52 = vpop.permute.xlu0 %3435 }
 0x3ce   : > { %3559 = vst.msk [vmem:[%s5729_s30 + $0x58] sm:$0xff] %vm3547_vm4, %v3526_v17  ;;  %v3523_v12 = vmax.f32 %v5590_v19, %v3436_v52 }
 0x3cf   : > { %v3438_v26 = vpop.permute.xlu1 %3437 }
 0x3d0   : > { %3556 = vst.msk [vmem:[%s5729_s30 + $0x40] sm:$0xff] %vm3547_vm4, %v3523_v12  ;;  %v3524_v51 = vmax.f32 %v5596_v27, %v3438_v26 }
 0x3d1   : > { %v3448_v11 = vpop.permute.xlu0 %3447 }
 0x3d2   : > { %3557 = vst.msk [vmem:[%s5729_s30 + $0x48] sm:$0xff] %vm3547_vm4, %v3524_v51  ;;  %v3529_v3 = vmax.f32 %v5608_v1, %v3448_v11 }
 0x3d3   : > { %v3450_v49 = vpop.permute.xlu1 %3449 }
 0x3d4   : > { %3562 = vst.msk [vmem:[%s5729_s30 + $0x70] sm:$0xff] %vm3547_vm4, %v3529_v3  ;;  %v3530_v29 = vmax.f32 %v5616_v15, %v3450_v49 }
 0x3d5   : > { %v3444_v10 = vpop.permute.xlu0 %3443 }
 0x3d6   : > { %3563 = vst.msk [vmem:[%s5729_s30 + $0x78] sm:$0xff] %vm3547_vm4, %v3530_v29  ;;  %v3527_v19 = vmax.f32 %v5614_v43, %v3444_v10 }
 0x3d7   : > { %v3446_v50 = vpop.permute.xlu1 %3445 }
 0x3d8   : > { %3560 = vst.msk [vmem:[%s5729_s30 + $0x60] sm:$0xff] %vm3547_vm4, %v3527_v19  ;;  %v3528_v27 = vmax.f32 %v5620_v36, %v3446_v50 }
 0x3d9   : > { %v3456_v2 = vpop.permute.xlu0 %3455 }
 0x3da   : > { %3561 = vst.msk [vmem:[%s5729_s30 + $0x68] sm:$0xff] %vm3547_vm4, %v3528_v27  ;;  %v3533_v1 = vmax.f32 %v5632_v22, %v3456_v2 }
 0x3db   : > { %v3458_v44 = vpop.permute.xlu1 %3457 }
 0x3dc   : > { %3566 = vst.msk [vmem:[%s5729_s30 + $0x90] sm:$0xff] %vm3547_vm4, %v3533_v1  ;;  %v3534_v15 = vmax.f32 %v5640_v42, %v3458_v44 }
 0x3dd   : > { %v3452_v59 = vpop.permute.xlu0 %3451 }
 0x3de   : > { %3567 = vst.msk [vmem:[%s5729_s30 + $0x98] sm:$0xff] %vm3547_vm4, %v3534_v15  ;;  %v3531_v43 = vmax.f32 %v5638_v54, %v3452_v59 }
 0x3df   : > { %v3454_v58 = vpop.permute.xlu1 %3453 }
 0x3e0   : > { %3564 = vst.msk [vmem:[%s5729_s30 + $0x80] sm:$0xff] %vm3547_vm4, %v3531_v43  ;;  %v3532_v36 = vmax.f32 %v5644_v46, %v3454_v58 }
 0x3e1   : > { %v3464_v38 = vpop.permute.xlu0 %3463 }
 0x3e2   : > { %3565 = vst.msk [vmem:[%s5729_s30 + $0x88] sm:$0xff] %vm3547_vm4, %v3532_v36  ;;  %v3537_v22 = vmax.f32 %v5656_v0, %v3464_v38 }
 0x3e3   : > { %v3466_v20 = vpop.permute.xlu1 %3465 }
 0x3e4   : > { %3570 = vst.msk [vmem:[%s5729_s30 + $0xb0] sm:$0xff] %vm3547_vm4, %v3537_v22  ;;  %v3538_v42 = vmax.f32 %v5664_v32, %v3466_v20 }
 0x3e5   : > { %v3460_v35 = vpop.permute.xlu0 %3459 }
 0x3e6   : > { %3571 = vst.msk [vmem:[%s5729_s30 + $0xb8] sm:$0xff] %vm3547_vm4, %v3538_v42  ;;  %v3535_v54 = vmax.f32 %v5662_v31, %v3460_v35 }
 0x3e7   : > { %v3462_v46 = vpop.permute.xlu1 %3461 }
 0x3e8   : > { %3568 = vst.msk [vmem:[%s5729_s30 + $0xa0] sm:$0xff] %vm3547_vm4, %v3535_v54  ;;  %v3536_v24 = vmax.f32 %v5668_v40, %v3462_v46 }
 0x3e9   : > { %v3472_v33 = vpop.permute.xlu0 %3471 }
 0x3ea   : > { %3569 = vst.msk [vmem:[%s5729_s30 + $0xa8] sm:$0xff] %vm3547_vm4, %v3536_v24  ;;  %v3541_v0 = vmax.f32 %v5680_v53, %v3472_v33 }
 0x3eb   : > { %v3474_v28 = vpop.permute.xlu1 %3473 }
 0x3ec   : > { %3574 = vst.msk [vmem:[%s5729_s30 + $0xd0] sm:$0xff] %vm3547_vm4, %v3541_v0  ;;  %v3542_v32 = vmax.f32 %v5688_v4, %v3474_v28 }
 0x3ed   : > { %v3468_v60 = vpop.permute.xlu0 %3467 }
 0x3ee   : > { %3575 = vst.msk [vmem:[%s5729_s30 + $0xd8] sm:$0xff] %vm3547_vm4, %v3542_v32  ;;  %v3539_v31 = vmax.f32 %v5686_v34, %v3468_v60 }
 0x3ef   : > { %v3470_v40 = vpop.permute.xlu1 %3469 }
 0x3f0   : > { %3572 = vst.msk [vmem:[%s5729_s30 + $0xc0] sm:$0xff] %vm3547_vm4, %v3539_v31  ;;  %v3540_v25 = vmax.f32 %v5692_v13, %v3470_v40 }
 0x3f2   : > { %3573 = vst.msk [vmem:[%s5729_s30 + $0xc8] sm:$0xff] %vm3547_vm4, %v3540_v25  ;;  %v3476_v53 = vpop.permute.xlu0 %3475 }
 0x3f3   : > { %v3543_v39 = vmax.f32 %v5710_v14, %v3476_v53 }
 0x3f4   : > { %v3478_v45 = vpop.permute.xlu1 %3477 }
 0x3f5   : > { %3576 = vst.msk [vmem:[%s5729_s30 + $0xe0] sm:$0xff] %vm3547_vm4, %v3543_v39  ;;  %v3544_v4 = vmax.f32 %v5714_v47, %v3478_v45 }
 0x3f6   : > { %v3480_v57 = vpop.permute.xlu0 %3479 }
 0x3f7   : > { %3577 = vst.msk [vmem:[%s5729_s30 + $0xe8] sm:$0xff] %vm3547_vm4, %v3544_v4  ;;  %v3545_v34 = vmax.f32 %v5704_v37, %v3480_v57 }
 0x3f8   : > { %v3482_v16 = vpop.permute.xlu1 %3481 }
 0x3f9   : > { %3578 = vst.msk [vmem:[%s5729_s30 + $0xf0] sm:$0xff] %vm3547_vm4, %v3545_v34  ;;  %v3546_v13 = vmax.f32 %v5712_v8, %v3482_v16 }
 0x3fb   : > { %3579 = vst.msk [vmem:[%s5729_s30 + $0xf8] sm:$0xff] %vm3547_vm4, %v3546_v13 }
 0x3fc PF: > { %s15_s18 = sadd.s32 1, %s4643_s18  }
 0x3fd   : > { %p12_p4 = scmp.ge.s32.totalorder %s15_s18, 4  }
 0x3ff   :  { %14 = sbr.rel (!%p12_p4) target bundleno = 1 (0x1), region = 81 }

</bundles_post_ra>
